<compile_context>
chip_gen: v7x
topology: tpu7x:2x2x1
jax: 0.10.0
libtpu: 0.0.40
codegen_flags: <defaults>
</compile_context>

<pallas_src>
import functools

import jax
import jax.numpy as jnp
from jax.experimental import pallas as pl
from jax.experimental.pallas import tpu as pltpu


def _cross_attn_kernel(q_ref, kv_ref, wq_ref, wkv_ref, wp3_ref, bp_ref, o_ref,
                       kp_scr, vp_scr, *, num_heads, head_dim, pack_rows):
    # q_ref  : (1, bq, C)  native dtype     kv_ref : (1, Lkv, C) native dtype
    # wq_ref : (C, C)  bf16 (softmax scale pre-folded by the wrapper)
    # wkv_ref: (C, 2C) bf16                 wp3_ref: (H, D, C) bf16
    # bp_ref : (1, C)  f32
    # o_ref  : (1, bq, C), or (1, bq // pack_rows, 128) when packing lanes
    # kp_scr / vp_scr : (Lkv, C) bf16 persistent scratch (cached kv projection)
    H, D = num_heads, head_dim
    C = H * D

    # --- kv projection: once per batch.  Grid order is (B outer, Lq-tiles
    # inner) and the Lq axis is "arbitrary", so i == 0 runs before every other
    # tile of the same batch; later tiles reuse the cached projection.
    @pl.when(pl.program_id(1) == 0)
    def _():
        kvx = kv_ref[0].astype(jnp.bfloat16)                     # (Lkv, C)
        kvp = jnp.dot(kvx, wkv_ref[...],
                      preferred_element_type=jnp.float32)        # (Lkv, 2C) f32
        kvp = kvp.astype(jnp.bfloat16)                           # shorten f32 live range
        kp_scr[...] = kvp[:, :C]
        vp_scr[...] = kvp[:, C:]

    # --- q projection (bf16 MXU operands, f32 accumulation); scale already in wq.
    qx = q_ref[0].astype(jnp.bfloat16)                           # (bq, C)
    qp = jnp.dot(qx, wq_ref[...],
                 preferred_element_type=jnp.float32).astype(jnp.bfloat16)
    bq = qp.shape[0]

    # --- head split into (H, len, D) batched operands (static lane slices +
    # leading-axis stack), then batched attention with head as the batch dim.
    def split_heads(x):
        return jnp.stack([x[:, h * D:(h + 1) * D] for h in range(H)], axis=0)

    qh = split_heads(qp)                                         # (H, bq, D)
    kh = split_heads(kp_scr[...])                                # (H, Lkv, D)
    vh = split_heads(vp_scr[...])                                # (H, Lkv, D)

    s = jnp.einsum('hqd,hkd->hqk', qh, kh,
                   preferred_element_type=jnp.float32)           # (H, bq, Lkv)

    # Softmax in f32 (matches the autocast(enabled=False) block).  attn_drop is
    # identity at p=0.0.  Note: approx reciprocal (EUP) is inference-grade; any
    # padded q rows in a ragged last tile are independent and their (possibly
    # garbage) results are dropped by the masked writeback.
    s = s - jnp.max(s, axis=-1, keepdims=True)
    p = jnp.exp(s)
    p = p * pl.reciprocal(jnp.sum(p, axis=-1, keepdims=True), approx=True)

    ctx = jnp.einsum('hqk,hkd->hqd', p.astype(jnp.bfloat16), vh,
                     preferred_element_type=jnp.float32)         # (H, bq, D)

    # --- output projection: batched over heads against the head-sliced (H, D, C)
    # weight, summed over heads — no concatenate / lane re-merge of head outputs.
    outh = jnp.einsum('hqd,hdc->hqc', ctx.astype(jnp.bfloat16), wp3_ref[...],
                      preferred_element_type=jnp.float32)        # (H, bq, C)
    out = (jnp.sum(outh, axis=0) + bp_ref[...]).astype(o_ref.dtype)   # (bq, C)

    if pack_rows > 1:
        # Lane-dense store: pack `pack_rows` contiguous row groups along lanes so
        # the stored block is 128 lanes wide (unmasked vst instead of vst.msk).
        g = bq // pack_rows
        o_ref[0] = jnp.concatenate(
            [out[j * g:(j + 1) * g, :] for j in range(pack_rows)], axis=-1)
    else:
        o_ref[0] = out


def cross_attention(q, kv, wq, wkv, wproj, bproj, *, num_heads, block_q=512):
    """Pallas CrossAttention forward.

    q:  (B, Lq, C)   kv: (B, Lkv, C)
    wq: (C, C)       wkv: (C, 2C)    wproj: (C, C)    bproj: (C,)
    Weights are (in_features, out_features): the kernel computes x @ W.
    """
    B, Lq, C = q.shape
    Lkv = kv.shape[1]
    head_dim = C // num_heads
    scale = head_dim ** -0.5
    out_dtype = q.dtype

    bq = Lq if Lq <= block_q else block_q
    nq = pl.cdiv(Lq, bq)
    grid = (B, nq)

    # Weight-side prep (tiny, per-call constants): fold the softmax scale into
    # wq, cast weights to bf16 for the MXU, pre-split wproj by head rows.
    # Activations (q, kv) are passed un-cast; the kernel casts them in VMEM.
    wq_bf = (wq * scale).astype(jnp.bfloat16)
    wkv_bf = wkv.astype(jnp.bfloat16)
    wp3_bf = wproj.reshape(num_heads, head_dim, C).astype(jnp.bfloat16)
    bp = bproj.reshape(1, C).astype(jnp.float32)

    # Lane-dense output packing: only when C divides the 128-lane vreg width and
    # the Lq tiling is exact (no padded rows mixed into packed store rows).
    pack_rows = 128 // C if (C < 128 and 128 % C == 0) else 1
    do_pack = (pack_rows > 1 and bq % pack_rows == 0 and Lq % bq == 0
               and ((bq // pack_rows) % 8 == 0 or nq == 1))
    if not do_pack:
        pack_rows = 1

    if pack_rows > 1:
        g = bq // pack_rows
        out_shape = jax.ShapeDtypeStruct((B, Lq // pack_rows, 128), out_dtype)
        out_spec = pl.BlockSpec((1, g, 128), lambda b, i: (b, i, 0))
    else:
        out_shape = jax.ShapeDtypeStruct((B, Lq, C), out_dtype)
        out_spec = pl.BlockSpec((1, bq, C), lambda b, i: (b, i, 0))

    kernel = functools.partial(_cross_attn_kernel, num_heads=num_heads,
                               head_dim=head_dim, pack_rows=pack_rows)

    out = pl.pallas_call(
        kernel,
        out_shape=out_shape,
        grid=grid,
        in_specs=[
            pl.BlockSpec((1, bq, C), lambda b, i: (b, i, 0)),      # q tile (native dtype)
            pl.BlockSpec((1, Lkv, C), lambda b, i: (b, 0, 0)),     # kv: re-DMA'd per batch only
            pl.BlockSpec((C, C), lambda b, i: (0, 0)),             # wq  (resident, scale folded)
            pl.BlockSpec((C, 2 * C), lambda b, i: (0, 0)),         # wkv (resident)
            pl.BlockSpec((num_heads, head_dim, C),
                         lambda b, i: (0, 0, 0)),                  # wproj, head-split (resident)
            pl.BlockSpec((1, C), lambda b, i: (0, 0)),             # bias (resident)
        ],
        out_specs=out_spec,
        scratch_shapes=[
            pltpu.VMEM((Lkv, C), jnp.bfloat16),   # cached k projection (per batch)
            pltpu.VMEM((Lkv, C), jnp.bfloat16),   # cached v projection (per batch)
        ],
        compiler_params=pltpu.CompilerParams(
            # B parallel (v7x megacore shards batches); the Lq-tile axis must be
            # "arbitrary" because the cached kv projection lives in scratch.
            dimension_semantics=("parallel", "arbitrary"),
            vmem_limit_bytes=32 * 1024 * 1024),
    )(q, kv, wq_bf, wkv_bf, wp3_bf, bp)

    if pack_rows > 1:
        g = bq // pack_rows
        out = (out.reshape(B, nq, g, pack_rows, C)
                  .transpose(0, 1, 3, 2, 4)
                  .reshape(B, Lq, C))
    return out


def _reference(q, kv, wq, wkv, wproj, bproj, *, num_heads):
    """Pure-JAX f32 reference mirroring the PyTorch forward."""
    B, Lq, C = q.shape
    Lkv = kv.shape[1]
    D = C // num_heads
    qp = (q @ wq).reshape(B, Lq, num_heads, D).transpose(0, 2, 1, 3)        # (B,H,Lq,D)
    kvp = (kv @ wkv).reshape(B, Lkv, 2, num_heads, D).transpose(2, 0, 3, 1, 4)
    k, v = kvp[0], kvp[1]                                                   # (B,H,Lkv,D)
    attn = jnp.einsum("bhqd,bhkd->bhqk", qp, k) * (D ** -0.5)
    attn = jax.nn.softmax(attn, axis=-1)
    out = jnp.einsum("bhqk,bhkd->bhqd", attn, v)                            # (B,H,Lq,D)
    out = out.transpose(0, 2, 1, 3).reshape(B, Lq, C)
    return out @ wproj + bproj


if __name__ == "__main__":
    # Small shapes consistent with the module: dim=64, num_heads=8 -> head_dim=8.
    B, Lq, Lkv, C, H = 2, 8, 16, 64, 8

    key = jax.random.PRNGKey(0)
    kq, kkv, kwq, kwkv, kwp, kbp = jax.random.split(key, 6)

    q = jax.random.normal(kq, (B, Lq, C), dtype=jnp.float32)
    kv = jax.random.normal(kkv, (B, Lkv, C), dtype=jnp.float32)

    # Deterministic parameter init (qkv_bias=False -> no biases on q/kv proj).
    wq = jax.random.normal(kwq, (C, C), dtype=jnp.float32) * 0.05
    wkv = jax.random.normal(kwkv, (C, 2 * C), dtype=jnp.float32) * 0.05
    wproj = jax.random.normal(kwp, (C, C), dtype=jnp.float32) * 0.05
    bproj = jax.random.normal(kbp, (C,), dtype=jnp.float32) * 0.05

    out = cross_attention(q, kv, wq, wkv, wproj, bproj, num_heads=H)
    out = jax.block_until_ready(out)

    ref = _reference(q, kv, wq, wkv, wproj, bproj, num_heads=H)
    assert out.shape == (B, Lq, C)
    # bf16 MXU operands + scale folded into bf16 wq + approx reciprocal ->
    # compare against the f32 reference with a bf16-appropriate tolerance.
    assert jnp.allclose(out, ref, atol=2e-2, rtol=2e-2), "mismatch vs reference"

    print("KERNEL_OK")
</pallas_src>

<mosaic_0001>
module attributes {stable_mosaic.version = 11 : i64} {
  func.func @_cross_attn_kernel(%arg0: i32, %arg1: i32, %arg2: memref<1x8x64xf32, #tpu.memory_space<vmem>>, %arg3: memref<1x16x64xf32, #tpu.memory_space<vmem>>, %arg4: memref<64x64xbf16, #tpu.memory_space<vmem>>, %arg5: memref<64x128xbf16, #tpu.memory_space<vmem>>, %arg6: memref<8x8x64xbf16, #tpu.memory_space<vmem>>, %arg7: memref<1x64xf32, #tpu.memory_space<vmem>>, %arg8: memref<1x4x128xf32, #tpu.memory_space<vmem>>, %arg9: memref<16x64xbf16, #tpu.memory_space<vmem>>, %arg10: memref<16x64xbf16, #tpu.memory_space<vmem>>) attributes {dimension_semantics = [#tpu.dimension_semantics<parallel>, #tpu.dimension_semantics<arbitrary>], iteration_bounds = array<i64: 2, 1>, scalar_prefetch = 0 : i64, scratch_operands = 2 : i64, tpu.core_type = #tpu.core_type<tc>, window_params = [{transform_indices = @transform_0, window_bounds = array<i64: 1, 8, 64>}, {transform_indices = @transform_1, window_bounds = array<i64: 1, 16, 64>}, {pipeline_mode = #tpu.pipeline_mode<synchronous>, transform_indices = @transform_2, window_bounds = array<i64: 64, 64>}, {pipeline_mode = #tpu.pipeline_mode<synchronous>, transform_indices = @transform_3, window_bounds = array<i64: 64, 128>}, {pipeline_mode = #tpu.pipeline_mode<synchronous>, transform_indices = @transform_4, window_bounds = array<i64: 8, 8, 64>}, {pipeline_mode = #tpu.pipeline_mode<synchronous>, transform_indices = @transform_5, window_bounds = array<i64: 1, 64>}, {transform_indices = @transform_6, window_bounds = array<i64: 1, 4, 128>}]} {
    %c0_i32 = arith.constant 0 : i32
    %0 = arith.cmpi eq, %arg1, %c0_i32 : i32
    %1 = arith.extui %0 : i1 to i32
    %c0_i32_0 = arith.constant 0 : i32
    %2 = arith.cmpi ne, %1, %c0_i32_0 : i32
    scf.if %2 {
      %c0_23 = arith.constant 0 : index
      %c0_24 = arith.constant 0 : index
      %c0_25 = arith.constant 0 : index
      %88 = vector.load %arg3[%c0_23, %c0_24, %c0_25] : memref<1x16x64xf32, #tpu.memory_space<vmem>>, vector<1x16x64xf32>
      %89 = vector.shape_cast %88 : vector<1x16x64xf32> to vector<16x64xf32>
      %90 = arith.truncf %89 : vector<16x64xf32> to vector<16x64xbf16>
      %c0_26 = arith.constant 0 : index
      %c0_27 = arith.constant 0 : index
      %91 = vector.load %arg5[%c0_26, %c0_27] : memref<64x128xbf16, #tpu.memory_space<vmem>>, vector<64x128xbf16>
      %cst_28 = arith.constant dense<0.000000e+00> : vector<16x128xf32>
      %92 = tpu.matmul %90, %91, %cst_28 {dimension_numbers = #tpu.dot_dimension_numbers<[1], [0], [0], [1], [0, 0, 1, 1], [], []>} : vector<16x64xbf16>, vector<64x128xbf16>, vector<16x128xf32> -> vector<16x128xf32>
      %93 = arith.truncf %92 : vector<16x128xf32> to vector<16x128xbf16>
      %94 = vector.extract_strided_slice %93 {offsets = [0, 0], sizes = [16, 64], strides = [1, 1]} : vector<16x128xbf16> to vector<16x64xbf16>
      %c0_29 = arith.constant 0 : index
      %c0_30 = arith.constant 0 : index
      %95 = vector.load %arg9[%c0_29, %c0_30] : memref<16x64xbf16, #tpu.memory_space<vmem>>, vector<16x64xbf16>
      tpu.vector_store %arg9[%c0_29, %c0_30], %94 {strides = array<i32>} : memref<16x64xbf16, #tpu.memory_space<vmem>>, vector<16x64xbf16>,
      %96 = vector.extract_strided_slice %93 {offsets = [0, 64], sizes = [16, 64], strides = [1, 1]} : vector<16x128xbf16> to vector<16x64xbf16>
      %c0_31 = arith.constant 0 : index
      %c0_32 = arith.constant 0 : index
      %97 = vector.load %arg10[%c0_31, %c0_32] : memref<16x64xbf16, #tpu.memory_space<vmem>>, vector<16x64xbf16>
      tpu.vector_store %arg10[%c0_31, %c0_32], %96 {strides = array<i32>} : memref<16x64xbf16, #tpu.memory_space<vmem>>, vector<16x64xbf16>,
    } else {
    }
    %c0 = arith.constant 0 : index
    %c0_1 = arith.constant 0 : index
    %c0_2 = arith.constant 0 : index
    %3 = vector.load %arg2[%c0, %c0_1, %c0_2] : memref<1x8x64xf32, #tpu.memory_space<vmem>>, vector<1x8x64xf32>
    %4 = vector.shape_cast %3 : vector<1x8x64xf32> to vector<8x64xf32>
    %5 = arith.truncf %4 : vector<8x64xf32> to vector<8x64xbf16>
    %c0_3 = arith.constant 0 : index
    %c0_4 = arith.constant 0 : index
    %6 = vector.load %arg4[%c0_3, %c0_4] : memref<64x64xbf16, #tpu.memory_space<vmem>>, vector<64x64xbf16>
    %cst = arith.constant dense<0.000000e+00> : vector<8x64xf32>
    %7 = tpu.matmul %5, %6, %cst {dimension_numbers = #tpu.dot_dimension_numbers<[1], [0], [0], [1], [0, 0, 1, 1], [], []>} : vector<8x64xbf16>, vector<64x64xbf16>, vector<8x64xf32> -> vector<8x64xf32>
    %8 = arith.truncf %7 : vector<8x64xf32> to vector<8x64xbf16>
    %9 = vector.extract_strided_slice %8 {offsets = [0, 0], sizes = [8, 8], strides = [1, 1]} : vector<8x64xbf16> to vector<8x8xbf16>
    %10 = vector.extract_strided_slice %8 {offsets = [0, 8], sizes = [8, 8], strides = [1, 1]} : vector<8x64xbf16> to vector<8x8xbf16>
    %11 = vector.extract_strided_slice %8 {offsets = [0, 16], sizes = [8, 8], strides = [1, 1]} : vector<8x64xbf16> to vector<8x8xbf16>
    %12 = vector.extract_strided_slice %8 {offsets = [0, 24], sizes = [8, 8], strides = [1, 1]} : vector<8x64xbf16> to vector<8x8xbf16>
    %13 = vector.extract_strided_slice %8 {offsets = [0, 32], sizes = [8, 8], strides = [1, 1]} : vector<8x64xbf16> to vector<8x8xbf16>
    %14 = vector.extract_strided_slice %8 {offsets = [0, 40], sizes = [8, 8], strides = [1, 1]} : vector<8x64xbf16> to vector<8x8xbf16>
    %15 = vector.extract_strided_slice %8 {offsets = [0, 48], sizes = [8, 8], strides = [1, 1]} : vector<8x64xbf16> to vector<8x8xbf16>
    %16 = vector.extract_strided_slice %8 {offsets = [0, 56], sizes = [8, 8], strides = [1, 1]} : vector<8x64xbf16> to vector<8x8xbf16>
    %17 = vector.shape_cast %9 : vector<8x8xbf16> to vector<1x8x8xbf16>
    %18 = vector.shape_cast %10 : vector<8x8xbf16> to vector<1x8x8xbf16>
    %19 = vector.shape_cast %11 : vector<8x8xbf16> to vector<1x8x8xbf16>
    %20 = vector.shape_cast %12 : vector<8x8xbf16> to vector<1x8x8xbf16>
    %21 = vector.shape_cast %13 : vector<8x8xbf16> to vector<1x8x8xbf16>
    %22 = vector.shape_cast %14 : vector<8x8xbf16> to vector<1x8x8xbf16>
    %23 = vector.shape_cast %15 : vector<8x8xbf16> to vector<1x8x8xbf16>
    %24 = vector.shape_cast %16 : vector<8x8xbf16> to vector<1x8x8xbf16>
    %25 = tpu.concatenate %17, %18, %19, %20, %21, %22, %23, %24 in 0 : vector<1x8x8xbf16>, vector<1x8x8xbf16>, vector<1x8x8xbf16>, vector<1x8x8xbf16>, vector<1x8x8xbf16>, vector<1x8x8xbf16>, vector<1x8x8xbf16>, vector<1x8x8xbf16> -> vector<8x8x8xbf16>
    %c0_5 = arith.constant 0 : index
    %c0_6 = arith.constant 0 : index
    %26 = vector.load %arg9[%c0_5, %c0_6] : memref<16x64xbf16, #tpu.memory_space<vmem>>, vector<16x64xbf16>
    %27 = vector.extract_strided_slice %26 {offsets = [0, 0], sizes = [16, 8], strides = [1, 1]} : vector<16x64xbf16> to vector<16x8xbf16>
    %28 = vector.extract_strided_slice %26 {offsets = [0, 8], sizes = [16, 8], strides = [1, 1]} : vector<16x64xbf16> to vector<16x8xbf16>
    %29 = vector.extract_strided_slice %26 {offsets = [0, 16], sizes = [16, 8], strides = [1, 1]} : vector<16x64xbf16> to vector<16x8xbf16>
    %30 = vector.extract_strided_slice %26 {offsets = [0, 24], sizes = [16, 8], strides = [1, 1]} : vector<16x64xbf16> to vector<16x8xbf16>
    %31 = vector.extract_strided_slice %26 {offsets = [0, 32], sizes = [16, 8], strides = [1, 1]} : vector<16x64xbf16> to vector<16x8xbf16>
    %32 = vector.extract_strided_slice %26 {offsets = [0, 40], sizes = [16, 8], strides = [1, 1]} : vector<16x64xbf16> to vector<16x8xbf16>
    %33 = vector.extract_strided_slice %26 {offsets = [0, 48], sizes = [16, 8], strides = [1, 1]} : vector<16x64xbf16> to vector<16x8xbf16>
    %34 = vector.extract_strided_slice %26 {offsets = [0, 56], sizes = [16, 8], strides = [1, 1]} : vector<16x64xbf16> to vector<16x8xbf16>
    %35 = vector.shape_cast %27 : vector<16x8xbf16> to vector<1x16x8xbf16>
    %36 = vector.shape_cast %28 : vector<16x8xbf16> to vector<1x16x8xbf16>
    %37 = vector.shape_cast %29 : vector<16x8xbf16> to vector<1x16x8xbf16>
    %38 = vector.shape_cast %30 : vector<16x8xbf16> to vector<1x16x8xbf16>
    %39 = vector.shape_cast %31 : vector<16x8xbf16> to vector<1x16x8xbf16>
    %40 = vector.shape_cast %32 : vector<16x8xbf16> to vector<1x16x8xbf16>
    %41 = vector.shape_cast %33 : vector<16x8xbf16> to vector<1x16x8xbf16>
    %42 = vector.shape_cast %34 : vector<16x8xbf16> to vector<1x16x8xbf16>
    %43 = tpu.concatenate %35, %36, %37, %38, %39, %40, %41, %42 in 0 : vector<1x16x8xbf16>, vector<1x16x8xbf16>, vector<1x16x8xbf16>, vector<1x16x8xbf16>, vector<1x16x8xbf16>, vector<1x16x8xbf16>, vector<1x16x8xbf16>, vector<1x16x8xbf16> -> vector<8x16x8xbf16>
    %c0_7 = arith.constant 0 : index
    %c0_8 = arith.constant 0 : index
    %44 = vector.load %arg10[%c0_7, %c0_8] : memref<16x64xbf16, #tpu.memory_space<vmem>>, vector<16x64xbf16>
    %45 = vector.extract_strided_slice %44 {offsets = [0, 0], sizes = [16, 8], strides = [1, 1]} : vector<16x64xbf16> to vector<16x8xbf16>
    %46 = vector.extract_strided_slice %44 {offsets = [0, 8], sizes = [16, 8], strides = [1, 1]} : vector<16x64xbf16> to vector<16x8xbf16>
    %47 = vector.extract_strided_slice %44 {offsets = [0, 16], sizes = [16, 8], strides = [1, 1]} : vector<16x64xbf16> to vector<16x8xbf16>
    %48 = vector.extract_strided_slice %44 {offsets = [0, 24], sizes = [16, 8], strides = [1, 1]} : vector<16x64xbf16> to vector<16x8xbf16>
    %49 = vector.extract_strided_slice %44 {offsets = [0, 32], sizes = [16, 8], strides = [1, 1]} : vector<16x64xbf16> to vector<16x8xbf16>
    %50 = vector.extract_strided_slice %44 {offsets = [0, 40], sizes = [16, 8], strides = [1, 1]} : vector<16x64xbf16> to vector<16x8xbf16>
    %51 = vector.extract_strided_slice %44 {offsets = [0, 48], sizes = [16, 8], strides = [1, 1]} : vector<16x64xbf16> to vector<16x8xbf16>
    %52 = vector.extract_strided_slice %44 {offsets = [0, 56], sizes = [16, 8], strides = [1, 1]} : vector<16x64xbf16> to vector<16x8xbf16>
    %53 = vector.shape_cast %45 : vector<16x8xbf16> to vector<1x16x8xbf16>
    %54 = vector.shape_cast %46 : vector<16x8xbf16> to vector<1x16x8xbf16>
    %55 = vector.shape_cast %47 : vector<16x8xbf16> to vector<1x16x8xbf16>
    %56 = vector.shape_cast %48 : vector<16x8xbf16> to vector<1x16x8xbf16>
    %57 = vector.shape_cast %49 : vector<16x8xbf16> to vector<1x16x8xbf16>
    %58 = vector.shape_cast %50 : vector<16x8xbf16> to vector<1x16x8xbf16>
    %59 = vector.shape_cast %51 : vector<16x8xbf16> to vector<1x16x8xbf16>
    %60 = vector.shape_cast %52 : vector<16x8xbf16> to vector<1x16x8xbf16>
    %61 = tpu.concatenate %53, %54, %55, %56, %57, %58, %59, %60 in 0 : vector<1x16x8xbf16>, vector<1x16x8xbf16>, vector<1x16x8xbf16>, vector<1x16x8xbf16>, vector<1x16x8xbf16>, vector<1x16x8xbf16>, vector<1x16x8xbf16>, vector<1x16x8xbf16> -> vector<8x16x8xbf16>
    "tpu.trace_start"() <{level = 10 : i32, message = "hqd,hkd->hqk"}> : () -> ()
    %cst_9 = arith.constant dense<0.000000e+00> : vector<8x8x16xf32>
    %62 = tpu.matmul %25, %43, %cst_9 {dimension_numbers = #tpu.dot_dimension_numbers<[2], [2], [1], [1], [0, 0, 0, 1, 1, 1], [0], [0]>} : vector<8x8x8xbf16>, vector<8x16x8xbf16>, vector<8x8x16xf32> -> vector<8x8x16xf32>
    "tpu.trace_stop"() : () -> ()
    %cst_10 = arith.constant dense<0xFF800000> : vector<8x8xf32>
    %63 = vector.multi_reduction <maximumf>, %62, %cst_10 [2] : vector<8x8x16xf32> to vector<8x8xf32>
    %64 = vector.shape_cast %63 : vector<8x8xf32> to vector<8x8x1xf32>
    %65 = vector.broadcast %64 : vector<8x8x1xf32> to vector<8x8x16xf32>
    %66 = arith.subf %62, %65 : vector<8x8x16xf32>
    %67 = math.exp %66 : vector<8x8x16xf32>
    %cst_11 = arith.constant dense<0.000000e+00> : vector<8x8xf32>
    %68 = vector.multi_reduction <add>, %67, %cst_11 [2] : vector<8x8x16xf32> to vector<8x8xf32>
    %69 = vector.shape_cast %68 : vector<8x8xf32> to vector<8x8x1xf32>
    %70 = tpu.reciprocal %69 {approx = true} : vector<8x8x1xf32> -> vector<8x8x1xf32>
    %71 = vector.broadcast %70 : vector<8x8x1xf32> to vector<8x8x16xf32>
    %72 = arith.mulf %67, %71 : vector<8x8x16xf32>
    %73 = arith.truncf %72 : vector<8x8x16xf32> to vector<8x8x16xbf16>
    "tpu.trace_start"() <{level = 10 : i32, message = "hqk,hkd->hqd"}> : () -> ()
    %cst_12 = arith.constant dense<0.000000e+00> : vector<8x8x8xf32>
    %74 = tpu.matmul %73, %61, %cst_12 {dimension_numbers = #tpu.dot_dimension_numbers<[2], [1], [1], [2], [0, 0, 0, 1, 1, 2], [0], [0]>} : vector<8x8x16xbf16>, vector<8x16x8xbf16>, vector<8x8x8xf32> -> vector<8x8x8xf32>
    "tpu.trace_stop"() : () -> ()
    %75 = arith.truncf %74 : vector<8x8x8xf32> to vector<8x8x8xbf16>
    %c0_13 = arith.constant 0 : index
    %c0_14 = arith.constant 0 : index
    %c0_15 = arith.constant 0 : index
    %76 = vector.load %arg6[%c0_13, %c0_14, %c0_15] : memref<8x8x64xbf16, #tpu.memory_space<vmem>>, vector<8x8x64xbf16>
    "tpu.trace_start"() <{level = 10 : i32, message = "hqd,hdc->hqc"}> : () -> ()
    %cst_16 = arith.constant dense<0.000000e+00> : vector<8x8x64xf32>
    %77 = tpu.matmul %75, %76, %cst_16 {dimension_numbers = #tpu.dot_dimension_numbers<[2], [1], [1], [2], [0, 0, 0, 1, 1, 2], [0], [0]>} : vector<8x8x8xbf16>, vector<8x8x64xbf16>, vector<8x8x64xf32> -> vector<8x8x64xf32>
    "tpu.trace_stop"() : () -> ()
    %cst_17 = arith.constant dense<0.000000e+00> : vector<8x64xf32>
    %78 = vector.multi_reduction <add>, %77, %cst_17 [0] : vector<8x8x64xf32> to vector<8x64xf32>
    %c0_18 = arith.constant 0 : index
    %c0_19 = arith.constant 0 : index
    %79 = vector.load %arg7[%c0_18, %c0_19] : memref<1x64xf32, #tpu.memory_space<vmem>>, vector<1x64xf32>
    %80 = vector.broadcast %79 : vector<1x64xf32> to vector<8x64xf32>
    %81 = arith.addf %78, %80 : vector<8x64xf32>
    %82 = vector.extract_strided_slice %81 {offsets = [0, 0], sizes = [4, 64], strides = [1, 1]} : vector<8x64xf32> to vector<4x64xf32>
    %83 = vector.extract_strided_slice %81 {offsets = [4, 0], sizes = [4, 64], strides = [1, 1]} : vector<8x64xf32> to vector<4x64xf32>
    %84 = tpu.concatenate %82, %83 in 1 : vector<4x64xf32>, vector<4x64xf32> -> vector<4x128xf32>
    %c0_20 = arith.constant 0 : index
    %c0_21 = arith.constant 0 : index
    %c0_22 = arith.constant 0 : index
    %85 = vector.load %arg8[%c0_20, %c0_21, %c0_22] : memref<1x4x128xf32, #tpu.memory_space<vmem>>, vector<1x4x128xf32>
    %86 = vector.shape_cast %85 : vector<1x4x128xf32> to vector<4x128xf32>
    %87 = vector.shape_cast %84 : vector<4x128xf32> to vector<1x4x128xf32>
    tpu.vector_store %arg8[%c0_20, %c0_21, %c0_22], %87 {strides = array<i32>} : memref<1x4x128xf32, #tpu.memory_space<vmem>>, vector<1x4x128xf32>,
    return
  }
  func.func @transform_0(%arg0: i32, %arg1: i32) -> (i32, i32, i32) {
    %c0_i32 = arith.constant 0 : i32
    %c0_i32_0 = arith.constant 0 : i32
    return %arg0, %arg1, %c0_i32 : i32, i32, i32
  }
  func.func @transform_1(%arg0: i32, %arg1: i32) -> (i32, i32, i32) {
    %c0_i32 = arith.constant 0 : i32
    %c0_i32_0 = arith.constant 0 : i32
    %c0_i32_1 = arith.constant 0 : i32
    return %arg0, %c0_i32, %c0_i32_0 : i32, i32, i32
  }
  func.func @transform_2(%arg0: i32, %arg1: i32) -> (i32, i32) {
    %c0_i32 = arith.constant 0 : i32
    %c0_i32_0 = arith.constant 0 : i32
    %c0_i32_1 = arith.constant 0 : i32
    return %c0_i32, %c0_i32_0 : i32, i32
  }
  func.func @transform_3(%arg0: i32, %arg1: i32) -> (i32, i32) {
    %c0_i32 = arith.constant 0 : i32
    %c0_i32_0 = arith.constant 0 : i32
    %c0_i32_1 = arith.constant 0 : i32
    return %c0_i32, %c0_i32_0 : i32, i32
  }
  func.func @transform_4(%arg0: i32, %arg1: i32) -> (i32, i32, i32) {
    %c0_i32 = arith.constant 0 : i32
    %c0_i32_0 = arith.constant 0 : i32
    %c0_i32_1 = arith.constant 0 : i32
    %c0_i32_2 = arith.constant 0 : i32
    return %c0_i32, %c0_i32_0, %c0_i32_1 : i32, i32, i32
  }
  func.func @transform_5(%arg0: i32, %arg1: i32) -> (i32, i32) {
    %c0_i32 = arith.constant 0 : i32
    %c0_i32_0 = arith.constant 0 : i32
    %c0_i32_1 = arith.constant 0 : i32
    return %c0_i32, %c0_i32_0 : i32, i32
  }
  func.func @transform_6(%arg0: i32, %arg1: i32) -> (i32, i32, i32) {
    %c0_i32 = arith.constant 0 : i32
    %c0_i32_0 = arith.constant 0 : i32
    return %arg0, %arg1, %c0_i32 : i32, i32, i32
  }
}

</mosaic_0001>

<bundles_post_ra>
// kernel: tpu_custom_call.1
= control target key start
LH: loop header
LB: loop body
LE: loop exit
PB: predicated region body
PF: predicated region fallthrough
CT: control target
= control target key end

     0   :  { %s3262_s0 = inlined_call_operand.hbm [shape: f32[2,8,64], index: 0, kind: input, shape index: {}]   ;;  %s3263_s1 = inlined_call_operand.hbm [shape: f32[2,16,64], index: 1, kind: input, shape index: {}]   ;;  %s3264_s2 = inlined_call_operand.hbm [shape: bf16[64,64], index: 2, kind: input, shape index: {}]   ;;  %s3265_s3 = inlined_call_operand.hbm [shape: bf16[64,128], index: 3, kind: input, shape index: {}]   ;;  %s3266_s4 = inlined_call_operand.hbm [shape: bf16[8,8,64], index: 4, kind: input, shape index: {}]   ;;  %s3267_s5 = inlined_call_operand.vmem [shape: f32[1,64], index: 5, kind: input, shape index: {}]   ;;  %s3268_s6 = inlined_call_operand.hbm [shape: f32[2,4,128], index: 6, kind: output, shape index: {}]  }
   0x1   :  { %3274 = sst [smem:[#allocation21_spill]] %s3262_s0 }
   0x2   :  { %3275 = sst [smem:[#allocation22_spill]] %s3264_s2 }
   0x3   :  { %11 = vsyncpa [#allocation5], 0 }
   0x4   :  { %13 = vsyncpa [#allocation5 + $0x1], 0 }
   0x5   :  { %14 = vsyncpa [#allocation8], 0 }
   0x6   :  { %16 = vsyncpa [#allocation8 + $0x1], 0 }
   0x7   :  { %17 = vsyncpa [#allocation11], 0 }
   0x8   :  { %18 = vsyncpa [#allocation6], 0 }
   0x9   :  { %20 = vsyncpa [#allocation6 + $0x1], 0  ;;  %s2695_s21 = smov 0   ;;  %s2697_s22 = smov 0  }
   0xa   :  { %s2699_s23 = smov 0   ;;  %s2701_s24 = smov 0  }
   0xb   :  { %s2703_s25 = smov 0   ;;  %s2705_s26 = smov 0  }
   0xc LB: > { %3276 = sst [smem:[#allocation19_spill]] %s2618_s21  ;;  %s2726_s27 = sadd.s32 4294967295, %s2638_s26   ;;  %s2638_s26 = sphi %s2705_s26, %s26_s26   ;;  %s2634_s25 = sphi %s2703_s25, %s3303_s25   ;;  %s2630_s24 = sphi %s2701_s24, %s3302_s24   ;;  %s2626_s23 = sphi %s2699_s23, %s3301_s23   ;;  %s2622_s22 = sphi %s2697_s22, %s3300_s22   ;;  %s2618_s21 = sphi %s2695_s21, %s3299_s21  }
   0xd   : > { %s1964_s28 = sadd.s32 4294967294, %s2638_s26   ;;  %p60_p0 = scmp.ne.s32.totalorder %s2622_s22, %s2618_s21 }
   0xe   : > { %p3269_p1 = scmp.eq.s32.totalorder %s2726_s27, 0  ;;  %p202_p3 = scmp.eq.s32.totalorder %s1964_s28, 1 }
   0xf   : > { %p1965_p5 = scmp.ge.s32.totalorder %s2638_s26, 1  ;;  %p209_p7 = scmp.lt.s32.totalorder %s2638_s26, 3 }
  0x10   : > { %p2735_p4 = por %p3269_p1, %p60_p0  ;;  %p2740_p6 = por %p202_p3, %p60_p0 }
  0x11   : > { %p2745_p8 = pnand %p1965_p5, %p209_p7  ;;  %s2640_s8 = smov [#allocation9]  }
  0x12   : > { %s3277_s29 = scalar_select %p2735_p4, 1, 0 }
  0x13   : > { %s3278_s30 = scalar_select %p2740_p6, 1, 0 }
  0x14   : > { %s3280_s7 = scalar_select %p2745_p8, 1, 0 }
  0x15   : > { %3279 = sst [smem:[#allocation20_spill]] %s3278_s30  ;;  %s221_s9 = sshll.u32 %s2640_s8, 4  ;;  %s2749_s9 = int_to_ptr.vmem [resolvable:$true] %s221_s9 }
  0x16   : > { %p2266_p9 = pneg %p2745_p8  ;;  %s2641_s11 = smov [#allocation10]  }
  0x17   : > { %s234_s12 = sshll.u32 %s2641_s11, 4  ;;  %s2642_s13 = smov [#allocation12]   ;;  %s2760_s12 = int_to_ptr.vmem [resolvable:$true] %s234_s12 }
  0x18   : > { %p2756_p11 = pnand %p2266_p9, %p3269_p1  ;;  %s2762_s14 = sshll.u32 %s2642_s13, 4  ;;  %s248_s14 = int_to_ptr.vmem [resolvable:$true] %s2762_s14 }
  0x19   : > { %s3282_s2 = sld [smem:[#allocation22_spill]] }
  0x1a   : > { %p2772_p13 = pneg %p2756_p11 }
  0x1f   : > { %s2400_s17 = scalar_lea.hbm %s3282_s2, 512 }
  0x20   : > { %p2401_p12 = scmp.ne.s32.totalorder %s3282_s2, %s2400_s17  ;;  %p2407_p5 = scmp.lt.u32.totalorder %s2400_s17, %s3282_s2 }
  0x22   : > { %p2403_p0 = pnand %p2772_p13, %p2401_p12 }
  0x24   : > { %p2404_p3 = pneg %p2403_p0 }
  0x26   : > { %p2409_p7 = pnand %p2407_p5, %p2404_p3 }
  0x28   : > { %2412 = shalt.err (!%p2409_p7)
}
  0x29   : > { %s2413_s11 = scalar_lea.vmem %s2749_s9, 512  ;;  %p2421_p2 = scmp.lt.s32.totalorder %s2749_s9, %s2749_s9 }
  0x2a   : > { %p2414_p9 = scmp.ne.s32.totalorder %s2749_s9, %s2413_s11  ;;  %p2422_p6 = scmp.lt.s32.totalorder %s2413_s11, %s2413_s11 }
  0x2c   : > { %p2416_p10 = pnand %p2414_p9, %p2772_p13  ;;  %p2423_p12 = por %p2422_p6, %p2421_p2 }
  0x2e   : > { %p2417_p1 = pneg %p2416_p10 }
  0x30   : > { %p2424_p0 = pnand %p2423_p12, %p2417_p1 }
  0x32   : > { %2427 = shalt.err (!%p2424_p0)
}
  0x33   : > { %s2643_s13 = smov 64   ;;  %s2644_s15 = smov 4  }
  0x34   : > { %2269 = dma.hbm_to_vmem [thread:$0]  (!%p2756_p11), %s3282_s2, 512, %s2749_s9, [#allocation8], %s2643_s13, %s2643_s13, %s2644_s15  }
  0x35   : > { %s2428_s28 = scalar_lea.hbm %s3265_s3, 512 }
  0x36   : > { %p2429_p1 = scmp.ne.s32.totalorder %s3265_s3, %s2428_s28  ;;  %p2435_p10 = scmp.lt.u32.totalorder %s2428_s28, %s3265_s3 }
  0x38   : > { %p2431_p2 = pnand %p2429_p1, %p2772_p13 }
  0x3a   : > { %p2432_p6 = pneg %p2431_p2 }
  0x3c   : > { %p2437_p3 = pnand %p2435_p10, %p2432_p6 }
  0x3e   : > { %2440 = shalt.err (!%p2437_p3)
}
  0x3f   : > { %s2441_s9 = scalar_lea.vmem %s2760_s12, 512  ;;  %p2449_p12 = scmp.lt.s32.totalorder %s2760_s12, %s2760_s12 }
  0x40   : > { %p2442_p5 = scmp.ne.s32.totalorder %s2760_s12, %s2441_s9  ;;  %p2450_p0 = scmp.lt.s32.totalorder %s2441_s9, %s2441_s9 }
  0x42   : > { %p2444_p7 = pnand %p2442_p5, %p2772_p13  ;;  %p2451_p1 = por %p2450_p0, %p2449_p12 }
  0x44   : > { %p2445_p9 = pneg %p2444_p7 }
  0x46   : > { %p2452_p2 = pnand %p2451_p1, %p2445_p9 }
  0x48   : > { %2455 = shalt.err (!%p2452_p2)
}
  0x49   : > { %2272 = dma.hbm_to_vmem [thread:$0]  (!%p2756_p11), %s3265_s3, 512, %s2760_s12, [#allocation11], %s2643_s13, %s2643_s13, %s2644_s15  }
  0x4a   : > { %s2456_s18 = scalar_lea.hbm %s3266_s4, 512 }
  0x4b   : > { %p2457_p6 = scmp.ne.s32.totalorder %s3266_s4, %s2456_s18  ;;  %p2463_p5 = scmp.lt.u32.totalorder %s2456_s18, %s3266_s4 }
  0x4d   : > { %p2459_p10 = pnand %p2457_p6, %p2772_p13 }
  0x4f   : > { %p2460_p3 = pneg %p2459_p10 }
  0x51   : > { %p2465_p7 = pnand %p2463_p5, %p2460_p3 }
  0x53   : > { %2468 = shalt.err (!%p2465_p7)
}
  0x54   : > { %s2469_s9 = scalar_lea.vmem %s248_s14, 512  ;;  %p2477_p1 = scmp.lt.s32.totalorder %s248_s14, %s248_s14 }
  0x55   : > { %p2470_p9 = scmp.ne.s32.totalorder %s248_s14, %s2469_s9  ;;  %p2478_p2 = scmp.lt.s32.totalorder %s2469_s9, %s2469_s9 }
  0x57   : > { %p2472_p12 = pnand %p2470_p9, %p2772_p13  ;;  %p2479_p4 = por %p2478_p2, %p2477_p1 }
  0x59   : > { %p2473_p0 = pneg %p2472_p12 }
  0x5b   : > { %p2480_p8 = pnand %p2479_p4, %p2473_p0 }
  0x5d   : > { %2483 = shalt.err (!%p2480_p8)
}
  0x5e   : > { %2275 = dma.hbm_to_vmem [thread:$0]  (!%p2756_p11), %s3266_s4, 512, %s248_s14, [#allocation11], %s2643_s13, %s2643_s13, %s2644_s15  }
  0x5f   : > { %s47_s20 = sadd.s32 1, %s2626_s23  ;;  %s38_s10 = sadd.s32 1, %s2634_s25 }
  0x60   : > { %p54_p4 = scmp.ne.s32.totalorder %s2626_s23, %s2622_s22  ;;  %p40_p8 = scmp.ge.s32.totalorder %s38_s10, 2 }
  0x61   : > { %p55_p13 = scmp.eq.s32.totalorder %s2638_s26, 0  ;;  %p3284_p6 = scmp.eq.s32.totalorder %s2726_s27, 1 }
  0x62   : > { %p2290_p3 = scmp.lt.s32.totalorder %s2638_s26, 2  ;;  %s3305_s10 = smov (%p40_p8, %s38_s10), 0 }
  0x63   : > { %p2851_p10 = por %p3284_p6, %p54_p4  ;;  %p56_p5 = por %p55_p13, %p54_p4 }
  0x64   : > { %s2859_s16 = sand.u32 1, %s2626_s23   ;;  %s42_s14 = ssub.s32 %s2634_s25, %s3305_s10 }
  0x65   : > { %p45_p11 = scmp.eq.s32.totalorder %s42_s14, 0  ;;  %s1970_s13 = sshll.u32 %s2859_s16, 3 }
  0x66   : > { %s1971_s15 = sshll.u32 %s2634_s25, 7  ;;  %s3286_s0 = sld [smem:[#allocation21_spill]] }
  0x67   : > { %s2866_s17 = scalar_select %p45_p11, %s2626_s23, %s47_s20  }
  0x68   : > { %s268_s8 = scalar_lea.vmem [#allocation4], %s1970_s13  ;;  %p2877_p7 = pnand %p2290_p3, %p56_p5 }
  0x69   : > { %s276_s11 = sshll.u32 %s268_s8, 4  ;;  %s1972_s12 = sshll.u32 %s2859_s16, 4  ;;  %s2873_s11 = int_to_ptr.vmem [resolvable:$true] %s276_s11 }
  0x6a   : > { %s265_s20 = scalar_lea.sflag [#allocation5], %s2859_s16  ;;  %p2486_p12 = pneg %p2877_p7 }
  0x6c   : > { %s2871_s28 = scalar_lea.hbm %s3286_s0, %s1971_s15  ;;  %s2489_s18 = scalar_lea.hbm %s3286_s0, 256 }
  0x6d   : > { %s2484_s14 = scalar_lea.hbm %s2871_s28, 128  ;;  %p2490_p2 = scmp.lt.u32.totalorder %s2871_s28, %s3286_s0 }
  0x6e   : > { %p2485_p9 = scmp.ne.s32.totalorder %s2871_s28, %s2484_s14  ;;  %p2491_p4 = scmp.lt.u32.totalorder %s2489_s18, %s2484_s14 }
  0x6f   : > { %p2493_p13 = scmp.lt.u32.totalorder %s2484_s14, %s2871_s28 }
  0x70   : > { %p2487_p0 = pnand %p2486_p12, %p2485_p9  ;;  %p2492_p8 = por %p2491_p4, %p2490_p2 }
  0x72   : > { %p2488_p1 = pneg %p2487_p0  ;;  %p2494_p6 = por %p2493_p13, %p2492_p8 }
  0x74   : > { %p2495_p3 = pnand %p2494_p6, %p2488_p1 }
  0x76   : > { %2498 = shalt.err (!%p2495_p3)
}
  0x77   : > { %s2499_s21 = scalar_lea.vmem %s2873_s11, 128  ;;  %s2645_s13 = smov [#allocation4]  }
  0x78   : > { %p2500_p5 = scmp.ne.s32.totalorder %s2873_s11, %s2499_s21  ;;  %s2504_s15 = sshll.u32 %s2645_s13, 4  ;;  %s2505_s15 = int_to_ptr.vmem [resolvable:$false] %s2504_s15 }
  0x79   : > { %s2506_s19 = scalar_lea.vmem %s2505_s15, 256  ;;  %p2507_p0 = scmp.lt.s32.totalorder %s2873_s11, %s2505_s15 }
  0x7a   : > { %p2502_p11 = pnand %p2500_p5, %p2486_p12  ;;  %p2508_p2 = scmp.lt.s32.totalorder %s2506_s19, %s2499_s21 }
  0x7c   : > { %p2503_p9 = pneg %p2502_p11  ;;  %p2509_p4 = por %p2508_p2, %p2507_p0 }
  0x7e   : > { %p2510_p8 = pnand %p2509_p4, %p2503_p9 }
  0x80   : > { %2513 = shalt.err (!%p2510_p8)
}
  0x81   : > { %2279 = dma.hbm_to_vmem [thread:$0]  (!%p2877_p7), %s2871_s28, 128, %s2873_s11, %s265_s20  }
  0x82   : > { %s287_s14 = scalar_lea.vmem [#allocation7], %s1972_s12  ;;  %s283_s8 = sand.u32 1, %s2638_s26  }
  0x83   : > { %s294_s18 = sshll.u32 %s287_s14, 4  ;;  %s3288_s13 = sshll.u32 %s2634_s25, 8  ;;  %s2912_s18 = int_to_ptr.vmem [resolvable:$true] %s294_s18 }
  0x84   : > { %s2919_s19 = scalar_lea.hbm %s3263_s1, %s3288_s13  ;;  %s2921_s0 = scalar_lea.sflag [#allocation8], %s283_s8 }
  0x85   : > { %s2514_s2 = scalar_lea.hbm %s2919_s19, 256  ;;  %s2519_s11 = scalar_lea.hbm %s3263_s1, 512 }
  0x86   : > { %p2515_p1 = scmp.ne.s32.totalorder %s2919_s19, %s2514_s2  ;;  %p2520_p3 = scmp.lt.u32.totalorder %s2919_s19, %s3263_s1 }
  0x87   : > { %p2521_p5 = scmp.lt.u32.totalorder %s2519_s11, %s2514_s2  ;;  %p2523_p9 = scmp.lt.u32.totalorder %s2514_s2, %s2919_s19 }
  0x88   : > { %p2517_p13 = pnand %p2515_p1, %p2486_p12 }
  0x89   : > { %p2522_p11 = por %p2521_p5, %p2520_p3 }
  0x8a   : > { %p2518_p6 = pneg %p2517_p13 }
  0x8b   : > { %p2524_p0 = por %p2523_p9, %p2522_p11 }
  0x8d   : > { %p2525_p2 = pnand %p2524_p0, %p2518_p6 }
  0x8f   : > { %2528 = shalt.err (!%p2525_p2)
}
  0x90   : > { %s2529_s14 = scalar_lea.vmem %s2912_s18, 256  ;;  %s2646_s8 = smov [#allocation7]  }
  0x91   : > { %p2530_p4 = scmp.ne.s32.totalorder %s2912_s18, %s2529_s14  ;;  %s2534_s13 = sshll.u32 %s2646_s8, 4  ;;  %s2535_s13 = int_to_ptr.vmem [resolvable:$false] %s2534_s13 }
  0x92   : > { %s2536_s21 = scalar_lea.vmem %s2535_s13, 512  ;;  %p2537_p13 = scmp.lt.s32.totalorder %s2912_s18, %s2535_s13 }
  0x93   : > { %p2532_p8 = pnand %p2530_p4, %p2486_p12  ;;  %p2538_p3 = scmp.lt.s32.totalorder %s2536_s21, %s2529_s14 }
  0x95   : > { %p2533_p1 = pneg %p2532_p8  ;;  %p2539_p5 = por %p2538_p3, %p2537_p13 }
  0x97   : > { %p2540_p11 = pnand %p2539_p5, %p2533_p1 }
  0x99   : > { %2543 = shalt.err (!%p2540_p11)
}
  0x9a   : > { %s2647_s2 = smov 128   ;;  %s2648_s15 = smov 8  }
  0x9b   : > { %2282 = dma.hbm_to_vmem [thread:$0]  (!%p2877_p7), %s2919_s19, 256, %s2912_s18, %s2921_s0, %s2647_s2, %s2647_s2, %s2648_s15  }
  0x9c   : > { %p3289_p12 = scmp.ne.s32.totalorder %s3280_s7, 0 }
  0x9d   : > { %s2950_s16 = sand.u32 (!%p3289_p12), 1, %s2622_s22   ;;  %p3290_p6 = scmp.ne.s32.totalorder (!%p3289_p12), %s3277_s29, 0 }
  0x9e   : > { %306 = sbr.rel (%p3289_p12) target bundleno = 1840 (0x730), region = 44  ;;  %s1976_s28 = sshll.u32 (!%p3289_p12), %s2950_s16, 3 }
  0x9f   : > { %s309_s11 = scalar_lea.sflag (!%p3289_p12), [#allocation5], %s2950_s16  ;;  %s2954_s12 = scalar_lea.vmem (!%p3289_p12), [#allocation4], %s1976_s28 }
  0xa5   : > { %2597 = dma.done.wait (%p3290_p6), %s309_s11, 128  }
  0xa6   : > { %2599 = vsyncadd (%p3290_p6), %s309_s11, 4294967168  ;;  %s317_s0 = sand.u32 1, %s2726_s27   ;;  %s1977_s7 = sshll.u32 %s2950_s16, 4 }
  0xa7   : > { %s318_s9 = scalar_lea.sflag [#allocation8], %s317_s0  ;;  %s321_s18 = scalar_lea.vmem [#allocation7], %s1977_s7 }
  0xa8   : > { %2601 = dma.done.wait (%p3290_p6), %s318_s9, 256  }
  0xa9   : > { %2603 = vsyncadd (%p3290_p6), %s318_s9, 4294967040  ;;  %p3291_p7 = scmp.eq.s32.totalorder %s2726_s27, 0 }
  0xab   : > { %2605 = dma.done.wait (%p3291_p7), [#allocation8], 512   ;;  %p3292_p9 = pmov %p3291_p7 }
  0xac   : > { %p3293_p0 = pmov %p3291_p7 }
  0xad   : > { %2607 = vsyncadd (%p3292_p9), [#allocation8], 4294966784 }
  0xae   : > { %2609 = dma.done.wait (%p3293_p0), [#allocation11], 1024   ;;  %p3294_p2 = pmov %p3293_p0 }
  0xaf   : > { %v2649_v0 = vmov 0.0   ;;  %vm2650_vm0 = vmmov 0   ;;  %v2360_v1 = vld [vmem:[#allocation10] sm:$0xff]   ;;  %v2361_v2 = vld [vmem:[#allocation10 + $0x8] sm:$0xff]   ;;  %v2363_v5 = vld [vmem:[#allocation10 + $0x10] sm:$0xff]   ;;  %vm407_vm1 = vcmask 523264  }
  0xb0   : > { %2611 = vsyncadd (%p3294_p2), [#allocation11], 4294966272  ;;  %2080 = vmatprep.subr.bf16.mxu0 %v2649_v0  ;;  %2092 = vmatprep.subr.bf16.mxu1 %v2649_v0  ;;  %v2362_v3 = vld [vmem:[#allocation9] sm:$0xff]   ;;  %v2364_v4 = vld [vmem:[#allocation9 + $0x8] sm:$0xff]   ;;  %s2651_s27 = smov 120   ;;  %vm592_vm2 = vcmask 64512  }
  0xb1   : > { %2088 = vmatprep.mubr.msk.bf16.mxu0 %vm2650_vm0, %v2649_v0  ;;  %2100 = vmatprep.mubr.msk.bf16.mxu1 %vm2650_vm0, %v2649_v0  ;;  %v2366_v6 = vld [vmem:[#allocation9 + $0x10] sm:$0xff]   ;;  %v2365_v7 = vld [vmem:[#allocation10 + $0x18] sm:$0xff]   ;;  %s2652_s29 = smov 104   ;;  %s2653_s19 = smov 96   ;;  %vm961_vm3 = vcmask 130048   ;;  %vm1421_vm4 = vcmask 1043456  }
  0xb2   : > { %2081 = vmatpush3.bf16.msra.mxu0 %v2360_v1  ;;  %2093 = vmatpush3.bf16.msra.mxu1 %v2362_v3  ;;  %v372_v8 = vld [vmem:[%s321_s18] sm:$0xff]  ;;  %v373_v9 = vld [vmem:[%s321_s18 + $0x8] sm:$0xff]  ;;  %s2654_s20 = smov 112   ;;  %s2655_s14 = smov 88  }
  0xb3   : > { %2082 = vmatprep.subr.bf16.mxu0 %v2649_v0  ;;  %2094 = vmatprep.subr.bf16.mxu1 %v2649_v0  ;;  %v2367_v10 = vld [vmem:[#allocation9 + $0x18] sm:$0xff]   ;;  %v374_v12 = vpack.c.bf16 %v373_v9, %v372_v8  ;;  %s2656_s8 = smov 80   ;;  %s2657_s13 = smov 72  }
  0xb4   : > { %v459_v11 = vld [vmem:[%s2954_s12] sm:$0xff]  ;;  %s2658_s21 = smov 64   ;;  %s1981_s28 = sshll.u32 %s2950_s16, 2 }
  0xb5   : > { %v460_v13 = vpack.c.bf16 %v459_v11, %v459_v11  ;;  %s2018_s11 = sshll.u32 %s2630_s24, 6  ;;  %s366_s12 = scalar_lea.vmem [#allocation13], %s1981_s28 }
  0xb6   : > { %2083 = vmatpush3.bf16.msra.mxu0 %v2361_v2  ;;  %2095 = vmatpush3.bf16.msra.mxu1 %v2364_v4  ;;  %s1832_s0 = sshll.u32 %s366_s12, 4  ;;  %s3212_s18 = scalar_lea.hbm %s3268_s6, %s2018_s11  ;;  %s3214_s0 = int_to_ptr.vmem [resolvable:$true] %s1832_s0 }
  0xb7   : > { %2084 = vmatprep.subr.bf16.mxu0 %v2649_v0  ;;  %2096 = vmatprep.subr.bf16.mxu1 %v2649_v0  ;;  %s2659_s24 = smov [#allocation13]  }
  0xba   : > { %2085 = vmatpush3.bf16.msra.mxu0 %v2363_v5  ;;  %2097 = vmatpush3.bf16.msra.mxu1 %v2366_v6 }
  0xbb   : > { %2086 = vmatprep.subr.bf16.mxu0 %v2649_v0  ;;  %2098 = vmatprep.subr.bf16.mxu1 %v2649_v0 }
  0xbe   : > { %2087 = vmatpush3.bf16.msra.mxu0 %v2365_v7  ;;  %2099 = vmatpush3.bf16.msra.mxu1 %v2367_v10 }
  0xbf   : > { %2104 = vmatprep.subr.bf16.mxu0 %v2649_v0  ;;  %2110 = vmatprep.subr.bf16.mxu1 %v2649_v0 }
  0xc1   : > { %2089 = vmatmul.mubr.msk.bf16.vlgmr.msra.gmra.mrb[0].mxu0 %vm407_vm1, %v374_v12  ;;  %2101 = vmatmul.mubr.msk.bf16.vlgmr.msra.gmra.mrb[0].mxu1 %vm407_vm1, %v460_v13 }
  0xc2   : > { %2106 = vmatprep.mubr.msk.bf16.mxu0 %vm2650_vm0, %v2649_v0  ;;  %2112 = vmatprep.mubr.msk.bf16.mxu1 %vm2650_vm0, %v2649_v0 }
 0x194   : > { %v445_v14 = vpop.f32.mrb[0].mxu0  ;;  %v531_v17 = vpop.f32.mrb[0].mxu1 }
 0x195   : > { %v2090_v15 = vpop.f32.mrb[1].mxu0  ;;  %v537_v20 = vpack.c.bf16 %v531_v17, %v531_v17  ;;  %v2102_v21 = vpop.f32.mrb[1].mxu1 }
 0x196   : > { %v448_v16 = vpop.f32.mrb[2].mxu0  ;;  %v534_v22 = vpop.f32.mrb[2].mxu1 }
 0x197   : > { %v2995_v18 = vpack.c.bf16 %v448_v16, %v445_v14  ;;  %v2091_v19 = vpop.f32.mrb[3].mxu0  ;;  %539 = vrot.lane.b32.xlu1 %v537_v20, %s2651_s27  ;;  %v2103_v23 = vpop.f32.mrb[3].mxu1 }
 0x199   : > { %453 = vst.msk [vmem:[#allocation2] sm:$0xff] %vm407_vm1, %v2995_v18 }
 0x1a0   : > { %v553_v24 = vld [vmem:[#allocation2] sm:$0xff] }
 0x1a1   : > { %559 = vrot.lane.b32.xlu1 %v553_v24, %s2652_s29  ;;  %555 = vrot.lane.b32.xlu0 %v553_v24, %s2651_s27  ;;  %v597_v25 = vsel %vm592_vm2, %v553_v24, 0 }
 0x1a2   : > { %2105 = vmatpush3.bf16.xpose.msra.mxu0 %v597_v25 }
 0x1a3   : > { %2116 = vmatprep.subr.bf16.mxu0 %v2649_v0 }
 0x1a5   : > { %561 = vrot.lane.b32.xlu1 %v553_v24, %s2653_s19  ;;  %557 = vrot.lane.b32.xlu0 %v553_v24, %s2654_s20 }
 0x1a9   : > { %563 = vrot.lane.b32.xlu1 %v553_v24, %s2655_s14  ;;  %541 = vrot.lane.b32.xlu0 %v537_v20, %s2654_s20 }
 0x1aa   : > { %2107 = vmatmul.mubr.msk.bf16.vlgmr.msra.gmra.mrb[4].mxu0 %vm592_vm2, %v537_v20 }
 0x1ab   : > { %2118 = vmatprep.mubr.msk.bf16.mxu0 %vm2650_vm0, %v2649_v0 }
 0x1ad   : > { %565 = vrot.lane.b32.xlu1 %v553_v24, %s2656_s8  ;;  %543 = vrot.lane.b32.xlu0 %v537_v20, %s2652_s29 }
 0x1b1   : > { %567 = vrot.lane.b32.xlu1 %v553_v24, %s2657_s13  ;;  %545 = vrot.lane.b32.xlu0 %v537_v20, %s2653_s19 }
 0x1b5   : > { %551 = vrot.lane.b32.xlu1 %v537_v20, %s2657_s13  ;;  %547 = vrot.lane.b32.xlu0 %v537_v20, %s2655_s14 }
 0x1b9   : > { %549 = vrot.lane.b32.xlu0 %v537_v20, %s2656_s8 }
 0x209   : > { %v540_v26 = vpop.permute.xlu1 %539 }
 0x213   : > { %v560_v27 = vpop.permute.xlu1 %559  ;;  %v556_v28 = vpop.permute.xlu0 %555 }
 0x214   : > { %v643_v29 = vsel %vm592_vm2, %v556_v28, 0  ;;  %v735_v34 = vsel %vm592_vm2, %v560_v27, 0 }
 0x215   : > { %2111 = vmatpush3.bf16.xpose.msra.mxu1 %v643_v29 }
 0x216   : > { %2122 = vmatprep.subr.bf16.mxu1 %v2649_v0 }
 0x217   : > { %v562_v30 = vpop.permute.xlu1 %561  ;;  %v558_v31 = vpop.permute.xlu0 %557 }
 0x218   : > { %v689_v32 = vsel %vm592_vm2, %v558_v31, 0  ;;  %v781_v37 = vsel %vm592_vm2, %v562_v30, 0 }
 0x219   : > { %2117 = vmatpush3.bf16.xpose.msra.mxu0 %v689_v32 }
 0x21a   : > { %2128 = vmatprep.subr.bf16.mxu0 %v2649_v0 }
 0x21b   : > { %v542_v33 = vpop.permute.xlu0 %541  ;;  %v564_v35 = vpop.permute.xlu1 %563 }
 0x21c   : > { %2113 = vmatmul.mubr.msk.bf16.vlgmr.msra.gmra.mrb[4].mxu1 %vm592_vm2, %v540_v26  ;;  %v827_v40 = vsel %vm592_vm2, %v564_v35, 0 }
 0x21d   : > { %2123 = vmatpush3.bf16.xpose.msra.mxu1 %v735_v34  ;;  %2124 = vmatprep.mubr.msk.bf16.mxu1 %vm2650_vm0, %v2649_v0 }
 0x21e   : > { %2134 = vmatprep.subr.bf16.mxu1 %v2649_v0 }
 0x21f   : > { %v544_v36 = vpop.permute.xlu0 %543  ;;  %v566_v38 = vpop.permute.xlu1 %565 }
 0x220   : > { %2119 = vmatmul.mubr.msk.bf16.vlgmr.msra.gmra.mrb[8].mxu0 %vm592_vm2, %v542_v33  ;;  %v873_v41 = vsel %vm592_vm2, %v566_v38, 0 }
 0x221   : > { %2129 = vmatpush3.bf16.xpose.msra.mxu0 %v781_v37  ;;  %2130 = vmatprep.mubr.msk.bf16.mxu0 %vm2650_vm0, %v2649_v0 }
 0x222   : > { %2140 = vmatprep.subr.bf16.mxu0 %v2649_v0 }
 0x223   : > { %v546_v39 = vpop.permute.xlu0 %545  ;;  %v568_v42 = vpop.permute.xlu1 %567 }
 0x224   : > { %2125 = vmatmul.mubr.msk.bf16.vlgmr.msra.gmra.mrb[8].mxu1 %vm592_vm2, %v544_v36  ;;  %v919_v44 = vsel %vm592_vm2, %v568_v42, 0 }
 0x225   : > { %2135 = vmatpush3.bf16.xpose.msra.mxu1 %v827_v40  ;;  %2136 = vmatprep.mubr.msk.bf16.mxu1 %vm2650_vm0, %v2649_v0 }
 0x226   : > { %2146 = vmatprep.subr.bf16.mxu1 %v2649_v0 }
 0x227   : > { %v548_v43 = vpop.permute.xlu0 %547  ;;  %v552_v46 = vpop.permute.xlu1 %551 }
 0x228   : > { %2131 = vmatmul.mubr.msk.bf16.vlgmr.msra.gmra.mrb[12].mxu0 %vm592_vm2, %v546_v39 }
 0x229   : > { %2141 = vmatpush3.bf16.xpose.msra.mxu0 %v873_v41  ;;  %2142 = vmatprep.mubr.msk.bf16.mxu0 %vm2650_vm0, %v2649_v0 }
 0x22a   : > { %2152 = vmatprep.subr.bf16.mxu0 %v2649_v0 }
 0x22b   : > { %v550_v45 = vpop.permute.xlu0 %549 }
 0x22c   : > { %2137 = vmatmul.mubr.msk.bf16.vlgmr.msra.gmra.mrb[12].mxu1 %vm592_vm2, %v548_v43 }
 0x22d   : > { %2147 = vmatpush3.bf16.xpose.msra.mxu1 %v919_v44  ;;  %2148 = vmatprep.mubr.msk.bf16.mxu1 %vm2650_vm0, %v2649_v0 }
 0x22e   : > { %2158 = vmatprep.subr.bf16.mxu1 %v2649_v0 }
 0x230   : > { %2143 = vmatmul.mubr.msk.bf16.vlgmr.msra.gmra.mrb[16].mxu0 %vm592_vm2, %v550_v45 }
 0x231   : > { %2154 = vmatprep.mubr.msk.bf16.mxu0 %vm2650_vm0, %v2649_v0 }
 0x234   : > { %2149 = vmatmul.mubr.msk.bf16.vlgmr.msra.gmra.mrb[16].mxu1 %vm592_vm2, %v552_v46 }
 0x235   : > { %2160 = vmatprep.mubr.msk.bf16.mxu1 %vm2650_vm0, %v2649_v0 }
 0x27d   : > { %v3053_v47 = vpop.f32.mrb[4].mxu0 }
 0x27e   : > { %v2108_v48 = vpop.f32.mrb[5].mxu0  ;;  %v962_v49 = vsel %vm961_vm3, %v3053_v47, -inf }
 0x27f   : > { %963 = vmax.xlane.f32.xlu0 %v962_v49  ;;  %v636_v50 = vpop.f32.mrb[6].mxu0 }
 0x280   : > { %v2109_v51 = vpop.f32.mrb[7].mxu0 }
 0x2ef   : > { %v3057_v52 = vpop.f32.mrb[4].mxu1 }
 0x2f0   : > { %v2114_v53 = vpop.f32.mrb[5].mxu1  ;;  %v965_v54 = vsel %vm961_vm3, %v3057_v52, -inf }
 0x2f1   : > { %966 = vmax.xlane.f32.xlu1 %v965_v54  ;;  %v682_v55 = vpop.f32.mrb[6].mxu1 }
 0x2f2   : > { %v2115_v56 = vpop.f32.mrb[7].mxu1 }
 0x2f3   : > { %v3061_v57 = vpop.f32.mrb[8].mxu0 }
 0x2f4   : > { %v2120_v58 = vpop.f32.mrb[9].mxu0  ;;  %v968_v59 = vsel %vm961_vm3, %v3061_v57, -inf }
 0x2f5   : > { %969 = vmax.xlane.f32.xlu0 %v968_v59  ;;  %v728_v60 = vpop.f32.mrb[10].mxu0 }
 0x2f6   : > { %v2121_v61 = vpop.f32.mrb[11].mxu0 }
 0x2f7   : > { %v771_v62 = vpop.f32.mrb[8].mxu1 }
 0x2f8   : > { %v2126_v63 = vpop.f32.mrb[9].mxu1  ;;  %v971_v1 = vsel %vm961_vm3, %v771_v62, -inf }
 0x2f9   : > { %v774_v2 = vpop.f32.mrb[10].mxu1  ;;  %972 = vmax.xlane.f32.xlu0 %v971_v1 }
 0x2fa   : > { %v2127_v3 = vpop.f32.mrb[11].mxu1 }
 0x2fb   : > { %v817_v4 = vpop.f32.mrb[12].mxu0 }
 0x2fc   : > { %v2132_v5 = vpop.f32.mrb[13].mxu0  ;;  %v974_v6 = vsel %vm961_vm3, %v817_v4, -inf }
 0x2fd   : > { %975 = vmax.xlane.f32.xlu1 %v974_v6  ;;  %v820_v7 = vpop.f32.mrb[14].mxu0 }
 0x2fe   : > { %v2133_v8 = vpop.f32.mrb[15].mxu0 }
 0x2ff   : > { %v3067_v9 = vpop.f32.mrb[12].mxu1 }
 0x300   : > { %v2138_v10 = vpop.f32.mrb[13].mxu1  ;;  %v977_v11 = vsel %vm961_vm3, %v3067_v9, -inf }
 0x301   : > { %v866_v12 = vpop.f32.mrb[14].mxu1  ;;  %978 = vmax.xlane.f32.xlu0 %v977_v11 }
 0x302   : > { %v2139_v13 = vpop.f32.mrb[15].mxu1 }
 0x303   : > { %v3071_v14 = vpop.f32.mrb[16].mxu0 }
 0x304   : > { %v2144_v15 = vpop.f32.mrb[17].mxu0  ;;  %v980_v16 = vsel %vm961_vm3, %v3071_v14, -inf }
 0x305   : > { %981 = vmax.xlane.f32.xlu1 %v980_v16  ;;  %v912_v17 = vpop.f32.mrb[18].mxu0 }
 0x306   : > { %v2145_v19 = vpop.f32.mrb[19].mxu0 }
 0x307   : > { %v3075_v20 = vpop.f32.mrb[16].mxu1 }
 0x308   : > { %v2150_v21 = vpop.f32.mrb[17].mxu1  ;;  %v983_v44 = vsel %vm961_vm3, %v3075_v20, -inf }
 0x309   : > { %v958_v22 = vpop.f32.mrb[18].mxu1 }
 0x30a   : > { %v2151_v23 = vpop.f32.mrb[19].mxu1 }
 0x316   : > { %455 = vrot.lane.b32.xlu1 %v2995_v18, %s2658_s21  ;;  %v964_v18 = vpop.xlane.xlu0 %963 }
 0x317   : > { %v986_v34 = vsub.f32 %v3053_v47, %v964_v18 }
 0x319   : > { %v994_v36 = vmul.f32 1.442695, %v986_v34 }
 0x37e   : > { %v967_v24 = vpop.xlane.xlu1 %966 }
 0x37f   : > { %v987_v37 = vsub.f32 %v3057_v52, %v967_v24 }
 0x381   : > { %v996_v38 = vmul.f32 1.442695, %v987_v37 }
 0x382   : > { %v970_v35 = vpop.xlane.xlu0 %969 }
 0x383   : > { %v988_v39 = vsub.f32 %v3061_v57, %v970_v35 }
 0x385   : > { %v998_v41 = vmul.f32 1.442695, %v988_v39 }
 0x386   : > { %v973_v40 = vpop.xlane.xlu0 %972 }
 0x387   : > { %v989_v42 = vsub.f32 %v771_v62, %v973_v40 }
 0x389   : > { %v1000_v43 = vmul.f32 1.442695, %v989_v42  ;;  %v1411_v42 = vld [vmem:[#allocation12 + $0x4] sm:$0xf] }
 0x38a   : > { %v976_v25 = vpop.xlane.xlu1 %975 }
 0x38b   : > { %v990_v26 = vsub.f32 %v817_v4, %v976_v25 }
 0x38d   : > { %v1002_v27 = vmul.f32 1.442695, %v990_v26 }
 0x38e   : > { %v979_v53 = vpop.xlane.xlu0 %978 }
 0x38f   : > { %2368 = vpow2.f32 %v1002_v27  ;;  %v991_v54 = vsub.f32 %v3067_v9, %v979_v53 }
 0x390   : > { %2370 = vpow2.f32 %v994_v36 }
 0x391   : > { %2372 = vpow2.f32 %v996_v38  ;;  %v1004_v55 = vmul.f32 1.442695, %v991_v54 }
 0x392   : > { %v982_v28 = vpop.xlane.xlu1 %981  ;;  %2374 = vpow2.f32 %v998_v41 }
 0x393   : > { %v992_v29 = vsub.f32 %v3071_v14, %v982_v28  ;;  %2376 = vpow2.f32 %v1000_v43 }
 0x394   : > { %2378 = vpow2.f32 %v1004_v55 }
 0x395   : > { %v1006_v56 = vmul.f32 1.442695, %v992_v29 }
 0x396   : > { %v456_v30 = vpop.permute.xlu1 %455 }
 0x397   : > { %458 = vst.msk [vmem:[#allocation3] sm:$0xff] %vm407_vm1, %v456_v30  ;;  %2380 = vpow2.f32 %v1006_v56 }
 0x399   : > { %v3081_v31 = vpop.eup %2368 }
 0x39a   : > { %v1022_v32 = vsel %vm961_vm3, %v3081_v31, 0.0  ;;  %v2371_v45 = vpop.eup %2370 }
 0x39b   : > { %1023 = vadd.xlane.f32.xlu1 %v1022_v32  ;;  %v1010_v46 = vsel %vm961_vm3, %v2371_v45, 0.0  ;;  %v2373_v47 = vpop.eup %2372 }
 0x39c   : > { %v1013_v48 = vsel %vm961_vm3, %v2373_v47, 0.0  ;;  %v2375_v49 = vpop.eup %2374 }
 0x39d   : > { %v1016_v50 = vsel %vm961_vm3, %v2375_v49, 0.0  ;;  %v2377_v51 = vpop.eup %2376 }
 0x39e   : > { %v3085_v33 = vld [vmem:[#allocation3] sm:$0xff]  ;;  %v1019_v52 = vsel %vm961_vm3, %v2377_v51, 0.0  ;;  %v3111_v57 = vpop.eup %2378 }
 0x39f   : > { %571 = vrot.lane.b32.xlu0 %v3085_v33, %s2651_s27  ;;  %2153 = vmatpush3.bf16.msra.mxu0 %v3085_v33  ;;  %v1025_v58 = vsel %vm961_vm3, %v3111_v57, 0.0  ;;  %s1818_s27 = scalar_lea.sflag [#allocation6], %s2950_s16 }
 0x3a0   : > { %2164 = vmatprep.subr.bf16.mxu0 %v2649_v0 }
 0x3a1   : > { %v3115_v59 = vpop.eup %2380 }
 0x3a2   : > { %v1028_v61 = vsel %vm961_vm3, %v3115_v59, 0.0 }
 0x3a3   : > { %574 = vrot.lane.b32.xlu0 %v3085_v33, %s2654_s20 }
 0x3ac   : > { %577 = vrot.lane.b32.xlu1 %v3085_v33, %s2652_s29  ;;  %s2544_s29 = scalar_lea.vmem %s3214_s0, 64 }
 0x3ad   : > { %p2545_p4 = scmp.ne.s32.totalorder %s3214_s0, %s2544_s29 }
 0x3af   : > { %p2546_p8 = pnand %p2545_p4, %p2851_p10 }
 0x3b1   : > { %p2547_p1 = pneg %p2546_p8 }
 0x3c2   : > { %984 = vmax.xlane.f32.xlu0 %v983_v44 }
 0x3c6   : > { %1011 = vadd.xlane.f32.xlu0 %v1010_v46  ;;  %v1412_v46 = vld [vmem:[#allocation12 + $0x8] sm:$0xf] }
 0x3ca   : > { %1014 = vadd.xlane.f32.xlu0 %v1013_v48 }
 0x3ce   : > { %1017 = vadd.xlane.f32.xlu0 %v1016_v50  ;;  %v1515_v50 = vsel %vm1421_vm4, %v1412_v46, 0 }
 0x3d2   : > { %1020 = vadd.xlane.f32.xlu0 %v1019_v52 }
 0x3e8   : > { %580 = vrot.lane.b32.xlu0 %v3085_v33, %s2653_s19  ;;  %s2548_s19 = sshll.u32 %s2659_s24, 4  ;;  %s2549_s19 = int_to_ptr.vmem [resolvable:$false] %s2548_s19 }
 0x3e9   : > { %s2550_s20 = scalar_lea.vmem %s2549_s19, 128  ;;  %p2551_p13 = scmp.lt.s32.totalorder %s3214_s0, %s2549_s19 }
 0x3ea   : > { %p2552_p3 = scmp.lt.s32.totalorder %s2550_s20, %s2544_s29 }
 0x3ec   : > { %583 = vrot.lane.b32.xlu0 %v3085_v33, %s2655_s14  ;;  %p2553_p5 = por %p2552_p3, %p2551_p13 }
 0x3ee   : > { %p2554_p11 = pnand %p2553_p5, %p2547_p1 }
 0x3f0   : > { %586 = vrot.lane.b32.xlu0 %v3085_v33, %s2656_s8 }
 0x40f   : > { %1026 = vadd.xlane.f32.xlu0 %v1025_v58 }
 0x411   : > { %v572_v60 = vpop.permute.xlu0 %571 }
 0x412   : > { %2159 = vmatpush3.bf16.msra.mxu1 %v572_v60  ;;  %v1414_v60 = vld [vmem:[#allocation12 + $0x10] sm:$0xf] }
 0x413   : > { %1029 = vadd.xlane.f32.xlu0 %v1028_v61  ;;  %2170 = vmatprep.subr.bf16.mxu1 %v2649_v0 }
 0x415   : > { %v575_v62 = vpop.permute.xlu0 %574 }
 0x428   : > { %v1024_v7 = vpop.xlane.xlu1 %1023 }
 0x42c   : > { %v578_v17 = vpop.permute.xlu1 %577 }
 0x44f   : > { %v985_v63 = vpop.xlane.xlu0 %984 }
 0x450   : > { %v993_v1 = vsub.f32 %v3075_v20, %v985_v63 }
 0x452   : > { %v1008_v2 = vmul.f32 1.442695, %v993_v1  ;;  %v1607_v1 = vsel %vm1421_vm4, %v1414_v60, 0 }
 0x453   : > { %v1012_v3 = vpop.xlane.xlu0 %1011 }
 0x454   : > { %2382 = vpow2.f32 %v1008_v2  ;;  %v1415_v2 = vld [vmem:[#allocation12 + $0x14] sm:$0xf] }
 0x455   : > { %2384 = vrcp.f32 %v1012_v3 }
 0x457   : > { %v1015_v4 = vpop.xlane.xlu0 %1014 }
 0x458   : > { %2386 = vrcp.f32 %v1015_v4 }
 0x45b   : > { %v1018_v5 = vpop.xlane.xlu0 %1017 }
 0x45c   : > { %2388 = vrcp.f32 %v1018_v5 }
 0x45e   : > { %v3121_v6 = vpop.eup %2382 }
 0x45f   : > { %v2385_v8 = vpop.eup %2384  ;;  %v1021_v9 = vpop.xlane.xlu0 %1020  ;;  %v1031_v10 = vsel %vm961_vm3, %v3121_v6, 0.0 }
 0x460   : > { %v1042_v11 = vmul.f32 %v2385_v8, %v2371_v45  ;;  %2390 = vrcp.f32 %v1021_v9  ;;  %1032 = vadd.xlane.f32.xlu0 %v1031_v10  ;;  %v1469_v45 = vsel %vm1421_vm4, %v1411_v42, 0  ;;  %v1653_v8 = vsel %vm1421_vm4, %v1415_v2, 0 }
 0x461   : > { %2392 = vrcp.f32 %v1024_v7 }
 0x462   : > { %v2387_v12 = vpop.eup %2386  ;;  %v1050_v13 = vpack.c.bf16 %v1042_v11, %v1042_v11  ;;  %v1416_v11 = vld [vmem:[#allocation12 + $0x18] sm:$0xf] }
 0x463   : > { %v1043_v14 = vmul.f32 %v2387_v12, %v2373_v47  ;;  %v581_v20 = vpop.permute.xlu0 %580 }
 0x464   : > { %2155 = vmatmul.mubr.msk.bf16.vlgmr.msra.gmra.mrb[20].mxu0 %vm961_vm3, %v1050_v13 }
 0x465   : > { %2165 = vmatpush3.bf16.msra.mxu0 %v575_v62  ;;  %v1051_v15 = vpack.c.bf16 %v1043_v14, %v1043_v14  ;;  %2166 = vmatprep.mubr.msk.bf16.mxu0 %vm2650_vm0, %v2649_v0 }
 0x466   : > { %v2389_v16 = vpop.eup %2388  ;;  %2176 = vmatprep.subr.bf16.mxu0 %v2649_v0 }
 0x467   : > { %v1044_v19 = vmul.f32 %v2389_v16, %v2375_v49  ;;  %2161 = vmatmul.mubr.msk.bf16.vlgmr.msra.gmra.mrb[20].mxu1 %vm961_vm3, %v1051_v15  ;;  %v584_v27 = vpop.permute.xlu0 %583  ;;  %v1699_v15 = vsel %vm1421_vm4, %v1416_v11, 0 }
 0x468   : > { %2171 = vmatpush3.bf16.msra.mxu1 %v578_v17  ;;  %2172 = vmatprep.mubr.msk.bf16.mxu1 %vm2650_vm0, %v2649_v0 }
 0x469   : > { %v1052_v21 = vpack.c.bf16 %v1044_v19, %v1044_v19  ;;  %2182 = vmatprep.subr.bf16.mxu1 %v2649_v0  ;;  %v1417_v19 = vld [vmem:[#allocation12 + $0x1c] sm:$0xf] }
 0x46a   : > { %v2391_v22 = vpop.eup %2390 }
 0x46b   : > { %v2393_v23 = vpop.eup %2392  ;;  %v1045_v24 = vmul.f32 %v2391_v22, %v2377_v51  ;;  %v587_v29 = vpop.permute.xlu0 %586  ;;  %v1413_v51 = vld [vmem:[#allocation12 + $0xc] sm:$0xf] }
 0x46c   : > { %2167 = vmatmul.mubr.msk.bf16.vlgmr.msra.gmra.mrb[24].mxu0 %vm961_vm3, %v1052_v21  ;;  %v1046_v26 = vmul.f32 %v2393_v23, %v3081_v31  ;;  %v1745_v23 = vsel %vm1421_vm4, %v1417_v19, 0 }
 0x46d   : > { %2177 = vmatpush3.bf16.msra.mxu0 %v581_v20  ;;  %v1053_v25 = vpack.c.bf16 %v1045_v24, %v1045_v24  ;;  %2178 = vmatprep.mubr.msk.bf16.mxu0 %vm2650_vm0, %v2649_v0 }
 0x46e   : > { %2188 = vmatprep.subr.bf16.mxu0 %v2649_v0  ;;  %v1054_v28 = vpack.c.bf16 %v1046_v26, %v1046_v26 }
 0x46f   : > { %2173 = vmatmul.mubr.msk.bf16.vlgmr.msra.gmra.mrb[24].mxu1 %vm961_vm3, %v1053_v25 }
 0x470   : > { %2183 = vmatpush3.bf16.msra.mxu1 %v584_v27  ;;  %2184 = vmatprep.mubr.msk.bf16.mxu1 %vm2650_vm0, %v2649_v0 }
 0x471   : > { %2194 = vmatprep.subr.bf16.mxu1 %v2649_v0 }
 0x474   : > { %2179 = vmatmul.mubr.msk.bf16.vlgmr.msra.gmra.mrb[28].mxu0 %vm961_vm3, %v1054_v28 }
 0x475   : > { %2189 = vmatpush3.bf16.msra.mxu0 %v587_v29  ;;  %2190 = vmatprep.mubr.msk.bf16.mxu0 %vm2650_vm0, %v2649_v0 }
 0x476   : > { %589 = vrot.lane.b32.xlu0 %v3085_v33, %s2657_s13  ;;  %2200 = vmatprep.subr.bf16.mxu0 %v2649_v0  ;;  %v1410_v33 = vld [vmem:[#allocation12] sm:$0xf] }
 0x477   : > { %v1423_v38 = vsel %vm1421_vm4, %v1410_v33, 0 }
 0x49c   : > { %v1027_v30 = vpop.xlane.xlu0 %1026 }
 0x49d   : > { %2394 = vrcp.f32 %v1027_v30 }
 0x4a0   : > { %v1030_v31 = vpop.xlane.xlu0 %1029 }
 0x4a1   : > { %2396 = vrcp.f32 %v1030_v31 }
 0x4a7   : > { %v2395_v32 = vpop.eup %2394 }
 0x4a8   : > { %v1047_v18 = vmul.f32 %v2395_v32, %v3111_v57  ;;  %v1561_v57 = vsel %vm1421_vm4, %v1413_v51, 0 }
 0x4aa   : > { %v1055_v34 = vpack.c.bf16 %v1047_v18, %v1047_v18 }
 0x4ab   : > { %v2397_v35 = vpop.eup %2396 }
 0x4ac   : > { %v1048_v36 = vmul.f32 %v2397_v35, %v3115_v59  ;;  %2185 = vmatmul.mubr.msk.bf16.vlgmr.msra.gmra.mrb[28].mxu1 %vm961_vm3, %v1055_v34 }
 0x4ad   : > { %2196 = vmatprep.mubr.msk.bf16.mxu1 %vm2650_vm0, %v2649_v0 }
 0x4ae   : > { %v1056_v37 = vpack.c.bf16 %v1048_v36, %v1048_v36 }
 0x4b0   : > { %2191 = vmatmul.mubr.msk.bf16.vlgmr.msra.gmra.mrb[32].mxu0 %vm961_vm3, %v1056_v37 }
 0x4b1   : > { %2202 = vmatprep.mubr.msk.bf16.mxu0 %vm2650_vm0, %v2649_v0  ;;  %2201 = vmatpush3.bf16.msra.mxu0 %v1423_v38 }
 0x4b2   : > { %2212 = vmatprep.subr.bf16.mxu0 %v2649_v0 }
 0x4ed   : > { %v1033_v39 = vpop.xlane.xlu0 %1032 }
 0x4ee   : > { %2398 = vrcp.f32 %v1033_v39 }
 0x4f1   : > { %v590_v40 = vpop.permute.xlu0 %589 }
 0x4f2   : > { %2195 = vmatpush3.bf16.msra.mxu1 %v590_v40 }
 0x4f3   : > { %2206 = vmatprep.subr.bf16.mxu1 %v2649_v0 }
 0x4f8   : > { %v2399_v41 = vpop.eup %2398 }
 0x4f9   : > { %v1049_v43 = vmul.f32 %v2399_v41, %v3121_v6 }
 0x4fb   : > { %v1057_v44 = vpack.c.bf16 %v1049_v43, %v1049_v43 }
 0x4fd   : > { %2197 = vmatmul.mubr.msk.bf16.vlgmr.msra.gmra.mrb[32].mxu1 %vm961_vm3, %v1057_v44 }
 0x4fe   : > { %2207 = vmatpush3.bf16.msra.mxu1 %v1469_v45  ;;  %2208 = vmatprep.mubr.msk.bf16.mxu1 %vm2650_vm0, %v2649_v0 }
 0x4ff   : > { %2218 = vmatprep.subr.bf16.mxu1 %v2649_v0 }
 0x537   : > { %v1095_v47 = vpop.f32.mrb[20].mxu0 }
 0x538   : > { %v1402_v48 = vpack.c.bf16 %v1095_v47, %v1095_v47  ;;  %v2156_v49 = vpop.f32.mrb[21].mxu0 }
 0x539   : > { %v1098_v52 = vpop.f32.mrb[22].mxu0 }
 0x53a   : > { %v2157_v53 = vpop.f32.mrb[23].mxu0  ;;  %2203 = vmatmul.mubr.msk.bf16.vlgmr.msra.gmra.mrb[36].mxu0 %vm592_vm2, %v1402_v48  ;;  %v1138_v54 = vpop.f32.mrb[20].mxu1 }
 0x53b   : > { %v1403_v55 = vpack.c.bf16 %v1138_v54, %v1138_v54  ;;  %v2162_v56 = vpop.f32.mrb[21].mxu1  ;;  %2213 = vmatpush3.bf16.msra.mxu0 %v1515_v50  ;;  %2214 = vmatprep.mubr.msk.bf16.mxu0 %vm2650_vm0, %v2649_v0 }
 0x53c   : > { %v1141_v58 = vpop.f32.mrb[22].mxu1  ;;  %2224 = vmatprep.subr.bf16.mxu0 %v2649_v0 }
 0x53d   : > { %v2163_v59 = vpop.f32.mrb[23].mxu1  ;;  %2209 = vmatmul.mubr.msk.bf16.vlgmr.msra.gmra.mrb[36].mxu1 %vm592_vm2, %v1403_v55 }
 0x53e   : > { %2219 = vmatpush3.bf16.msra.mxu1 %v1561_v57  ;;  %2220 = vmatprep.mubr.msk.bf16.mxu1 %vm2650_vm0, %v2649_v0 }
 0x53f   : > { %v1181_v61 = vpop.f32.mrb[24].mxu0  ;;  %2230 = vmatprep.subr.bf16.mxu1 %v2649_v0 }
 0x540   : > { %v1404_v62 = vpack.c.bf16 %v1181_v61, %v1181_v61  ;;  %v2168_v63 = vpop.f32.mrb[25].mxu0 }
 0x541   : > { %v1184_v3 = vpop.f32.mrb[26].mxu0 }
 0x542   : > { %v2169_v4 = vpop.f32.mrb[27].mxu0  ;;  %2215 = vmatmul.mubr.msk.bf16.vlgmr.msra.gmra.mrb[40].mxu0 %vm592_vm2, %v1404_v62  ;;  %v1224_v5 = vpop.f32.mrb[24].mxu1 }
 0x543   : > { %v1405_v6 = vpack.c.bf16 %v1224_v5, %v1224_v5  ;;  %v2174_v7 = vpop.f32.mrb[25].mxu1  ;;  %2225 = vmatpush3.bf16.msra.mxu0 %v1607_v1  ;;  %2226 = vmatprep.mubr.msk.bf16.mxu0 %vm2650_vm0, %v2649_v0 }
 0x544   : > { %v1227_v9 = vpop.f32.mrb[26].mxu1  ;;  %2236 = vmatprep.subr.bf16.mxu0 %v2649_v0 }
 0x545   : > { %v2175_v10 = vpop.f32.mrb[27].mxu1  ;;  %2221 = vmatmul.mubr.msk.bf16.vlgmr.msra.gmra.mrb[40].mxu1 %vm592_vm2, %v1405_v6 }
 0x546   : > { %2231 = vmatpush3.bf16.msra.mxu1 %v1653_v8  ;;  %2232 = vmatprep.mubr.msk.bf16.mxu1 %vm2650_vm0, %v2649_v0 }
 0x547   : > { %v1267_v12 = vpop.f32.mrb[28].mxu0  ;;  %2242 = vmatprep.subr.bf16.mxu1 %v2649_v0 }
 0x548   : > { %v1406_v13 = vpack.c.bf16 %v1267_v12, %v1267_v12  ;;  %v2180_v14 = vpop.f32.mrb[29].mxu0 }
 0x549   : > { %v1270_v16 = vpop.f32.mrb[30].mxu0  ;;  %v2016_v14 = vld [vmem:[%s3267_s5] ss:$0 sm:$0xff] }
 0x54a   : > { %v2181_v17 = vpop.f32.mrb[31].mxu0  ;;  %2227 = vmatmul.mubr.msk.bf16.vlgmr.msra.gmra.mrb[44].mxu0 %vm592_vm2, %v1406_v13 }
 0x54b   : > { %2237 = vmatpush3.bf16.msra.mxu0 %v1699_v15  ;;  %2238 = vmatprep.mubr.msk.bf16.mxu0 %vm2650_vm0, %v2649_v0 }
 0x57f   : > { %v1310_v20 = vpop.f32.mrb[28].mxu1 }
 0x580   : > { %v1407_v21 = vpack.c.bf16 %v1310_v20, %v1310_v20  ;;  %v2186_v22 = vpop.f32.mrb[29].mxu1 }
 0x581   : > { %v1313_v24 = vpop.f32.mrb[30].mxu1 }
 0x582   : > { %v2187_v25 = vpop.f32.mrb[31].mxu1  ;;  %2233 = vmatmul.mubr.msk.bf16.vlgmr.msra.gmra.mrb[44].mxu1 %vm592_vm2, %v1407_v21 }
 0x583   : > { %v1353_v26 = vpop.f32.mrb[32].mxu0  ;;  %2243 = vmatpush3.bf16.msra.mxu1 %v1745_v23  ;;  %2244 = vmatprep.mubr.msk.bf16.mxu1 %vm2650_vm0, %v2649_v0 }
 0x584   : > { %v1408_v27 = vpack.c.bf16 %v1353_v26, %v1353_v26  ;;  %v2192_v28 = vpop.f32.mrb[33].mxu0 }
 0x585   : > { %v1356_v29 = vpop.f32.mrb[34].mxu0 }
 0x586   : > { %v2193_v30 = vpop.f32.mrb[35].mxu0  ;;  %2239 = vmatmul.mubr.msk.bf16.vlgmr.msra.gmra.mrb[48].mxu0 %vm592_vm2, %v1408_v27 }
 0x5d0   : > { %v1396_v31 = vpop.f32.mrb[32].mxu1 }
 0x5d1   : > { %v1409_v32 = vpack.c.bf16 %v1396_v31, %v1396_v31  ;;  %v2198_v18 = vpop.f32.mrb[33].mxu1 }
 0x5d2   : > { %v1399_v34 = vpop.f32.mrb[34].mxu1 }
 0x5d3   : > { %v2199_v35 = vpop.f32.mrb[35].mxu1  ;;  %2245 = vmatmul.mubr.msk.bf16.vlgmr.msra.gmra.mrb[48].mxu1 %vm592_vm2, %v1409_v32 }
 0x60d   : > { %v1459_v36 = vpop.f32.mrb[36].mxu0 }
 0x60e   : > { %v2204_v37 = vpop.f32.mrb[37].mxu0  ;;  %v1787_v0 = vsel %vm407_vm1, %v1459_v36, 0.0 }
 0x60f   : > { %v1462_v33 = vpop.f32.mrb[38].mxu0 }
 0x610   : > { %v2205_v38 = vpop.f32.mrb[39].mxu0  ;;  %v1505_v39 = vpop.f32.mrb[36].mxu1 }
 0x611   : > { %v1788_v40 = vsel %vm407_vm1, %v1505_v39, 0.0  ;;  %v2210_v41 = vpop.f32.mrb[37].mxu1 }
 0x612   : > { %v1789_v42 = vadd.f32 %v1788_v40, %v1787_v0  ;;  %v1508_v43 = vpop.f32.mrb[38].mxu1 }
 0x613   : > { %v2211_v44 = vpop.f32.mrb[39].mxu1 }
 0x615   : > { %v1551_v45 = vpop.f32.mrb[40].mxu0 }
 0x616   : > { %v1790_v46 = vsel %vm407_vm1, %v1551_v45, 0.0  ;;  %v2216_v47 = vpop.f32.mrb[41].mxu0 }
 0x617   : > { %v1791_v48 = vadd.f32 %v1790_v46, %v1789_v42  ;;  %v1554_v49 = vpop.f32.mrb[42].mxu0 }
 0x618   : > { %v2217_v50 = vpop.f32.mrb[43].mxu0  ;;  %v1597_v51 = vpop.f32.mrb[40].mxu1 }
 0x619   : > { %v1792_v52 = vsel %vm407_vm1, %v1597_v51, 0.0  ;;  %v2222_v53 = vpop.f32.mrb[41].mxu1 }
 0x61a   : > { %v1793_v54 = vadd.f32 %v1792_v52, %v1791_v48  ;;  %v1600_v55 = vpop.f32.mrb[42].mxu1 }
 0x61b   : > { %v2223_v56 = vpop.f32.mrb[43].mxu1 }
 0x61d   : > { %v1643_v57 = vpop.f32.mrb[44].mxu0 }
 0x61e   : > { %v1794_v58 = vsel %vm407_vm1, %v1643_v57, 0.0  ;;  %v2228_v59 = vpop.f32.mrb[45].mxu0 }
 0x61f   : > { %v1795_v60 = vadd.f32 %v1794_v58, %v1793_v54  ;;  %v1646_v61 = vpop.f32.mrb[46].mxu0 }
 0x620   : > { %v2229_v62 = vpop.f32.mrb[47].mxu0 }
 0x655   : > { %v1689_v63 = vpop.f32.mrb[44].mxu1 }
 0x656   : > { %v1796_v1 = vsel %vm407_vm1, %v1689_v63, 0.0  ;;  %v2234_v2 = vpop.f32.mrb[45].mxu1 }
 0x657   : > { %v1797_v3 = vadd.f32 %v1796_v1, %v1795_v60  ;;  %v1692_v4 = vpop.f32.mrb[46].mxu1 }
 0x658   : > { %v2235_v5 = vpop.f32.mrb[47].mxu1 }
 0x659   : > { %v1735_v6 = vpop.f32.mrb[48].mxu0 }
 0x65a   : > { %v1798_v7 = vsel %vm407_vm1, %v1735_v6, 0.0  ;;  %v2240_v8 = vpop.f32.mrb[49].mxu0 }
 0x65b   : > { %v1799_v9 = vadd.f32 %v1798_v7, %v1797_v3  ;;  %v1738_v10 = vpop.f32.mrb[50].mxu0 }
 0x65c   : > { %v2241_v11 = vpop.f32.mrb[51].mxu0 }
 0x6a6   : > { %v1781_v12 = vpop.f32.mrb[48].mxu1 }
 0x6a7   : > { %v1800_v13 = vsel %vm407_vm1, %v1781_v12, 0.0  ;;  %v2246_v15 = vpop.f32.mrb[49].mxu1 }
 0x6a8   : > { %v1801_v16 = vadd.f32 %v1800_v13, %v1799_v9  ;;  %v1784_v17 = vpop.f32.mrb[50].mxu1 }
 0x6a9   : > { %v2247_v19 = vpop.f32.mrb[51].mxu1 }
 0x6aa   : > { %v1809_v20 = vadd.f32 %v2016_v14, %v1801_v16 }
 0x6ac   : > { %v1811_v21 = vrot.slane %v1809_v20, 4 }
 0x6ae   : > { %1812 = vrot.lane.b32.xlu1 %v1811_v21, %s2658_s21 }
 0x720   : > { %v1813_v22 = vpop.permute.xlu1 %1812 }
 0x721   : > { %v1815_v23 = vsel %vm407_vm1, %v1809_v20, %v1813_v22 }
 0x722   : > { %1816 = vst [vmem:[%s366_s12] sm:$0xf] %v1815_v23 }
 0x723   : > { %2557 = shalt.err (!%p2554_p11)
}
 0x724   : > { %s2558_s16 = scalar_lea.hbm %s3212_s18, 64  ;;  %s2562_s13 = scalar_lea.hbm %s3268_s6, 128 }
 0x725   : > { %p2559_p12 = scmp.ne.s32.totalorder %s3212_s18, %s2558_s16  ;;  %p2563_p9 = scmp.lt.u32.totalorder %s3212_s18, %s3268_s6 }
 0x726   : > { %p2564_p0 = scmp.lt.u32.totalorder %s2562_s13, %s2558_s16  ;;  %p2566_p4 = scmp.lt.u32.totalorder %s2558_s16, %s3212_s18 }
 0x727   : > { %p2560_p6 = pnand %p2559_p12, %p2851_p10 }
 0x728   : > { %p2565_p2 = por %p2564_p0, %p2563_p9 }
 0x729   : > { %p2561_p7 = pneg %p2560_p6 }
 0x72a   : > { %p2567_p8 = por %p2566_p4, %p2565_p2 }
 0x72c   : > { %p2568_p1 = pnand %p2567_p8, %p2561_p7 }
 0x72e   : > { %2571 = shalt.err (!%p2568_p1)
}
 0x72f   : > { %2264 = dma.vmem_to_hbm [thread:$0]  (%p2851_p10), %s3214_s0, 64, %s3212_s18, %s1818_s27  }
 0x730 PF: > { %s3295_s15 = sld [smem:[#allocation19_spill]]  ;;  %s3296_s28 = sld [smem:[#allocation20_spill]] }
 0x731   : > { %p3298_p3 = scmp.ge.s32.totalorder %s2638_s26, 2 }
 0x736   : > { %s1844_s11 = sand.u32 1, %s3295_s15   ;;  %p3297_p13 = scmp.ne.s32.totalorder %s3296_s28, 0 }
 0x737   : > { %s1845_s12 = scalar_lea.sflag [#allocation6], %s1844_s11 }
 0x738   : > { %p2284_p5 = pnand %p3298_p3, %p3297_p13 }
 0x73a   : > { %2613 = dma.done.wait (!%p2284_p5), %s1845_s12, 64  }
 0x73b   : > { %2615 = vsyncadd (!%p2284_p5), %s1845_s12, 4294967232  ;;  %s26_s26 = sadd.s32 1, %s2638_s26   ;;  %s3299_s21 = smov %s2622_s22 }
 0x73c   : > { %p23_p11 = scmp.ge.s32.totalorder %s26_s26, 4   ;;  %s3300_s22 = smov %s2626_s23 }
 0x73d   : > { %s3301_s23 = smov %s2866_s17  ;;  %s3302_s24 = smov %s2634_s25 }
 0x73e   : > { %s3303_s25 = smov %s3305_s10  ;;  %25 = sbr.rel (!%p23_p11) target bundleno = 12 (0xc), region = 118 }
 0x745   :  { %1850 = vsyncpa [#allocation5], 1 }
 0x746   :  { %1852 = vsyncpa [#allocation5 + $0x1], 1 }
 0x747   :  { %1853 = vsyncpa [#allocation8], 1 }
 0x748   :  { %1855 = vsyncpa [#allocation8 + $0x1], 1 }
 0x749   :  { %1856 = vsyncpa [#allocation11], 1 }
 0x74a   :  { %1857 = vsyncpa [#allocation6], 1 }
 0x74b   :  { %1859 = vsyncpa [#allocation6 + $0x1], 1 }

</bundles_post_ra>
